<compile_context>
chip_gen: v5e
topology: v5e:2x2
jax: 0.10.0
libtpu: 0.0.40
codegen_flags: <defaults>
</compile_context>

<pallas_src>
import math

import jax
import jax.numpy as jnp
from jax.experimental import pallas as pl
from jax.experimental.pallas import tpu as pltpu

# ---- tiny synthetic RoBERTa config ----
VOCAB = 100
MAX_POS = 16
TYPE_VOCAB = 1
HIDDEN = 32
N_HEADS = 4
HEAD_DIM = HIDDEN // N_HEADS
N_LAYERS = 2
INTERMEDIATE = 64
NUM_CLASSES = 1
LN_EPS = 1e-5


# ----------------------------------------------------------------------------
# Fused whole-forward Pallas kernel
# ----------------------------------------------------------------------------
def _make_bertmoji_kernel(B, S):
    f32 = jnp.float32
    G = N_HEADS * B  # batched-attention group dim (head-major, batch-minor)

    def layer_norm(x, g, b):
        # sum(x) and sum(x*x) are independent reductions; var = E[x^2] - mu^2
        mu = jnp.mean(x, axis=-1, keepdims=True)
        ms = jnp.mean(x * x, axis=-1, keepdims=True)
        var = ms - mu * mu
        return (x - mu) * jax.lax.rsqrt(var + LN_EPS) * g + b

    def gelu(x):
        # TODO(synk): HF RoBERTa uses exact erf-GELU; tanh approximation used
        # here for guaranteed Mosaic lowering (numerically very close).
        return 0.5 * x * (1.0 + jnp.tanh(0.7978845608028654 * (x + 0.044715 * x * x * x)))

    def kernel(ids_ref,                       # SMEM [B, S] int32
               amask_ref,                     # VMEM [B, S] int32
               hmask_ref,                     # VMEM [nH, H] f32 lane masks
               word_ref, pos_ref, type_ref,   # embedding tables (VMEM resident)
               emb_g_ref, emb_b_ref,
               qkv_w_ref, qkv_b_ref, o_w_ref, o_b_ref,
               ln1_g_ref, ln1_b_ref,
               ff1_w_ref, ff1_b_ref, ff2_w_ref, ff2_b_ref,
               ln2_g_ref, ln2_b_ref,
               pool_w_ref, pool_b_ref, cls_w_ref, cls_b_ref,
               out_ref,
               h_scratch):                    # VMEM [B*S, H] f32 scratch
        # --- fused embedding lookup: dynamic row gathers from the resident ---
        # --- word table driven by SMEM scalar ids, written into scratch    ---
        for b in range(B):
            for s in range(S):
                r = b * S + s
                h_scratch[r:r + 1, :] = word_ref[pl.ds(ids_ref[b, s], 1), :]
        pos = jnp.broadcast_to(pos_ref[0:S, :][None, :, :],
                               (B, S, HIDDEN)).reshape(B * S, HIDDEN)
        h = h_scratch[...] + pos + type_ref[...]                       # [B*S, H]
        h = layer_norm(h, emb_g_ref[...], emb_b_ref[...])

        # --- additive attention mask built in-kernel: [G, 1, S] ---
        am = (amask_ref[...].astype(f32) - 1.0) * 1e9                  # 0 attend, -1e9 pad
        am_g = jnp.broadcast_to(am[None, :, :], (N_HEADS, B, S)).reshape(G, 1, S)

        hm4 = hmask_ref[...][:, None, None, :]                         # [nH,1,1,H]

        for l in range(N_LAYERS):
            # --- fused QKV projection (1/sqrt(dh) pre-folded into Q columns) ---
            qkv = jnp.dot(h, qkv_w_ref[l], preferred_element_type=f32) + qkv_b_ref[l]
            q3 = qkv[:, 0:HIDDEN].reshape(B, S, HIDDEN)
            k3 = qkv[:, HIDDEN:2 * HIDDEN].reshape(B, S, HIDDEN)
            v3 = qkv[:, 2 * HIDDEN:3 * HIDDEN].reshape(B, S, HIDDEN)

            # --- batched multi-head attention: all (head, batch) pairs on one
            #     dot_general batch dim; heads selected by lane masks on Q and V.
            qh = (q3[None, :, :, :] * hm4).reshape(G, S, HIDDEN)
            kh = jnp.broadcast_to(k3[None, :, :, :],
                                  (N_HEADS, B, S, HIDDEN)).reshape(G, S, HIDDEN)
            vh = (v3[None, :, :, :] * hm4).reshape(G, S, HIDDEN)       # V masked pre-matmul

            s_ = jax.lax.dot_general(qh, kh, (((2,), (2,)), ((0,), (0,))),
                                     preferred_element_type=f32)       # [G, S, S]
            s_ = s_ + am_g
            s_ = s_ - jnp.max(s_, axis=-1, keepdims=True)
            p = jnp.exp(s_)
            p = p * pl.reciprocal(jnp.sum(p, axis=-1, keepdims=True), approx=True)
            o = jax.lax.dot_general(p, vh, (((2,), (1,)), ((0,), (0,))),
                                    preferred_element_type=f32)        # [G, S, H]
            # per-head outputs occupy disjoint lanes -> sum over heads == concat
            ctx = jnp.sum(o.reshape(N_HEADS, B * S, HIDDEN), axis=0)   # [B*S, H]

            attn = jnp.dot(ctx, o_w_ref[l], preferred_element_type=f32) + o_b_ref[l]
            h = layer_norm(attn + h, ln1_g_ref[l], ln1_b_ref[l])

            # --- feed-forward ---
            ffn = gelu(jnp.dot(h, ff1_w_ref[l], preferred_element_type=f32) + ff1_b_ref[l])
            ffn = jnp.dot(ffn, ff2_w_ref[l], preferred_element_type=f32) + ff2_b_ref[l]
            h = layer_norm(ffn + h, ln2_g_ref[l], ln2_b_ref[l])

        # --- RoBERTa pooler == roberta(...)[1]: tanh(dense(h[:, 0, :])) ---
        h_cls = h.reshape(B, S, HIDDEN)[:, 0:1, :].reshape(B, HIDDEN)  # [B, H], no concat
        pooled = jnp.tanh(jnp.dot(h_cls, pool_w_ref[...], preferred_element_type=f32)
                          + pool_b_ref[...])
        # --- classifier head (nn.Dropout is identity at inference) ---
        logits = jnp.dot(pooled, cls_w_ref[...], preferred_element_type=f32) + cls_b_ref[...]
        out_ref[...] = logits.astype(out_ref.dtype)

    return kernel


# ----------------------------------------------------------------------------
# Parameter init (deterministic, synthetic) and packing for the fused kernel
# ----------------------------------------------------------------------------
def init_params(key):
    keys = iter(jax.random.split(key, 128))

    def nrm(shape, scale=0.02):
        return (scale * jax.random.normal(next(keys), shape)).astype(jnp.float32)

    params = {
        "word_emb": nrm((VOCAB, HIDDEN)),
        "pos_emb": nrm((MAX_POS, HIDDEN)),
        "type_emb": nrm((TYPE_VOCAB, HIDDEN)),
        "emb_ln_g": jnp.ones((HIDDEN,), jnp.float32),
        "emb_ln_b": jnp.zeros((HIDDEN,), jnp.float32),
        "layers": [],
        # RoBERTa pooler: dense(H,H) + tanh on the [CLS] token -> roberta(...)[1]
        "pooler_w": nrm((HIDDEN, HIDDEN)),
        "pooler_b": jnp.zeros((HIDDEN,), jnp.float32),
        # bertmoji classifier head: nn.Linear(hidden_size, num_classes=1)
        "cls_w": nrm((HIDDEN, NUM_CLASSES)),
        "cls_b": jnp.zeros((NUM_CLASSES,), jnp.float32),
    }
    for _ in range(N_LAYERS):
        params["layers"].append({
            "q_w": nrm((HIDDEN, HIDDEN)), "q_b": jnp.zeros((HIDDEN,), jnp.float32),
            "k_w": nrm((HIDDEN, HIDDEN)), "k_b": jnp.zeros((HIDDEN,), jnp.float32),
            "v_w": nrm((HIDDEN, HIDDEN)), "v_b": jnp.zeros((HIDDEN,), jnp.float32),
            "o_w": nrm((HIDDEN, HIDDEN)), "o_b": jnp.zeros((HIDDEN,), jnp.float32),
            "ln1_g": jnp.ones((HIDDEN,), jnp.float32),
            "ln1_b": jnp.zeros((HIDDEN,), jnp.float32),
            "ff1_w": nrm((HIDDEN, INTERMEDIATE)),
            "ff1_b": jnp.zeros((INTERMEDIATE,), jnp.float32),
            "ff2_w": nrm((INTERMEDIATE, HIDDEN)),
            "ff2_b": jnp.zeros((HIDDEN,), jnp.float32),
            "ln2_g": jnp.ones((HIDDEN,), jnp.float32),
            "ln2_b": jnp.zeros((HIDDEN,), jnp.float32),
        })
    return params


def pack_params(params):
    """Stack per-layer weights, fuse QKV, fold 1/sqrt(dh) into Q, build head masks."""
    scale = 1.0 / math.sqrt(HEAD_DIM)
    L = params["layers"]

    def stack(key):
        return jnp.stack([lp[key] for lp in L])

    def stack_bias(key, n):
        return jnp.stack([lp[key].reshape(1, n) for lp in L])

    qkv_w = jnp.stack([jnp.concatenate([lp["q_w"] * scale, lp["k_w"], lp["v_w"]], axis=1)
                       for lp in L])                                           # [L, H, 3H]
    qkv_b = jnp.stack([jnp.concatenate([lp["q_b"] * scale, lp["k_b"], lp["v_b"]])
                       .reshape(1, 3 * HIDDEN) for lp in L])                   # [L, 1, 3H]

    return {
        "word_emb": params["word_emb"],
        "pos_emb": params["pos_emb"],
        "type_emb": params["type_emb"],                                        # [1, H]
        "emb_ln_g": params["emb_ln_g"].reshape(1, HIDDEN),
        "emb_ln_b": params["emb_ln_b"].reshape(1, HIDDEN),
        "qkv_w": qkv_w, "qkv_b": qkv_b,
        "o_w": stack("o_w"), "o_b": stack_bias("o_b", HIDDEN),
        "ln1_g": stack_bias("ln1_g", HIDDEN), "ln1_b": stack_bias("ln1_b", HIDDEN),
        "ff1_w": stack("ff1_w"), "ff1_b": stack_bias("ff1_b", INTERMEDIATE),
        "ff2_w": stack("ff2_w"), "ff2_b": stack_bias("ff2_b", HIDDEN),
        "ln2_g": stack_bias("ln2_g", HIDDEN), "ln2_b": stack_bias("ln2_b", HIDDEN),
        "pooler_w": params["pooler_w"],
        "pooler_b": params["pooler_b"].reshape(1, HIDDEN),
        "cls_w": params["cls_w"],
        "cls_b": params["cls_b"].reshape(1, NUM_CLASSES),
        # lane masks selecting each head's dh-wide slice of the hidden dim
        "head_mask": jnp.repeat(jnp.eye(N_HEADS, dtype=jnp.float32), HEAD_DIM, axis=1),
    }


# ----------------------------------------------------------------------------
# Forward pass:  logits = dropout(W(roberta(input_ids, attention_mask)[1]))
# Everything (embeddings, 2 transformer layers, pooler, classifier) is ONE
# pallas_call; the wrapper does no compute at all.
# ----------------------------------------------------------------------------
@jax.jit
def bertmoji_forward(packed, input_ids, attention_mask):
    B, S = input_ids.shape
    smem = pl.BlockSpec(memory_space=pltpu.MemorySpace.SMEM)   # input_ids -> SMEM scalars
    vmem = pl.BlockSpec(memory_space=pltpu.MemorySpace.VMEM)   # everything else resident

    logits = pl.pallas_call(
        _make_bertmoji_kernel(B, S),
        out_shape=jax.ShapeDtypeStruct((B, NUM_CLASSES), jnp.float32),
        in_specs=[smem] + [vmem] * 23,
        out_specs=vmem,
        scratch_shapes=[pltpu.VMEM((B * S, HIDDEN), jnp.float32)],
    )(input_ids, attention_mask, packed["head_mask"],
      packed["word_emb"], packed["pos_emb"], packed["type_emb"],
      packed["emb_ln_g"], packed["emb_ln_b"],
      packed["qkv_w"], packed["qkv_b"], packed["o_w"], packed["o_b"],
      packed["ln1_g"], packed["ln1_b"],
      packed["ff1_w"], packed["ff1_b"], packed["ff2_w"], packed["ff2_b"],
      packed["ln2_g"], packed["ln2_b"],
      packed["pooler_w"], packed["pooler_b"], packed["cls_w"], packed["cls_b"])
    return logits  # [B, num_classes] = [B, 1]


if __name__ == "__main__":
    key = jax.random.PRNGKey(0)
    pkey, ikey = jax.random.split(key)
    params = init_params(pkey)
    packed = pack_params(params)

    B, S = 2, 8
    input_ids = jax.random.randint(ikey, (B, S), 0, VOCAB, dtype=jnp.int32)
    # second sequence has 3 padding positions to exercise the mask
    attention_mask = jnp.array([[1, 1, 1, 1, 1, 1, 1, 1],
                                [1, 1, 1, 1, 1, 0, 0, 0]], dtype=jnp.int32)

    logits = bertmoji_forward(packed, input_ids, attention_mask)
    logits = jax.block_until_ready(logits)
    assert logits.shape == (B, NUM_CLASSES)
    assert bool(jnp.all(jnp.isfinite(logits)))
    print("KERNEL_OK")
</pallas_src>

<mosaic_0001>
module attributes {stable_mosaic.version = 11 : i64} {
  func.func @kernel(%arg0: memref<2x8xi32, #tpu.memory_space<smem>>, %arg1: memref<2x8xi32, #tpu.memory_space<vmem>>, %arg2: memref<4x32xf32, #tpu.memory_space<vmem>>, %arg3: memref<100x32xf32, #tpu.memory_space<vmem>>, %arg4: memref<16x32xf32, #tpu.memory_space<vmem>>, %arg5: memref<1x32xf32, #tpu.memory_space<vmem>>, %arg6: memref<1x32xf32, #tpu.memory_space<vmem>>, %arg7: memref<1x32xf32, #tpu.memory_space<vmem>>, %arg8: memref<2x32x96xf32, #tpu.memory_space<vmem>>, %arg9: memref<2x1x96xf32, #tpu.memory_space<vmem>>, %arg10: memref<2x32x32xf32, #tpu.memory_space<vmem>>, %arg11: memref<2x1x32xf32, #tpu.memory_space<vmem>>, %arg12: memref<2x1x32xf32, #tpu.memory_space<vmem>>, %arg13: memref<2x1x32xf32, #tpu.memory_space<vmem>>, %arg14: memref<2x32x64xf32, #tpu.memory_space<vmem>>, %arg15: memref<2x1x64xf32, #tpu.memory_space<vmem>>, %arg16: memref<2x64x32xf32, #tpu.memory_space<vmem>>, %arg17: memref<2x1x32xf32, #tpu.memory_space<vmem>>, %arg18: memref<2x1x32xf32, #tpu.memory_space<vmem>>, %arg19: memref<2x1x32xf32, #tpu.memory_space<vmem>>, %arg20: memref<32x32xf32, #tpu.memory_space<vmem>>, %arg21: memref<1x32xf32, #tpu.memory_space<vmem>>, %arg22: memref<32x1xf32, #tpu.memory_space<vmem>>, %arg23: memref<1x1xf32, #tpu.memory_space<vmem>>, %arg24: memref<2x1xf32, #tpu.memory_space<vmem>>, %arg25: memref<16x32xf32, #tpu.memory_space<vmem>>) attributes {dimension_semantics = [], scalar_prefetch = 0 : i64, scratch_operands = 1 : i64, tpu.core_type = #tpu.core_type<tc>} {
    %c0 = arith.constant 0 : index
    %c0_0 = arith.constant 0 : index
    %0 = memref.load %arg0[%c0, %c0_0] : memref<2x8xi32, #tpu.memory_space<smem>>
    %1 = arith.index_cast %0 : i32 to index
    %c0_1 = arith.constant 0 : index
    %2 = vector.load %arg3[%1, %c0_1] : memref<100x32xf32, #tpu.memory_space<vmem>>, vector<1x32xf32>
    %c0_2 = arith.constant 0 : index
    %c0_3 = arith.constant 0 : index
    %3 = vector.load %arg25[%c0_2, %c0_3] : memref<16x32xf32, #tpu.memory_space<vmem>>, vector<1x32xf32>
    tpu.vector_store %arg25[%c0_2, %c0_3], %2 {strides = array<i32>} : memref<16x32xf32, #tpu.memory_space<vmem>>, vector<1x32xf32>,
    %c0_4 = arith.constant 0 : index
    %c1 = arith.constant 1 : index
    %4 = memref.load %arg0[%c0_4, %c1] : memref<2x8xi32, #tpu.memory_space<smem>>
    %5 = arith.index_cast %4 : i32 to index
    %c0_5 = arith.constant 0 : index
    %6 = vector.load %arg3[%5, %c0_5] : memref<100x32xf32, #tpu.memory_space<vmem>>, vector<1x32xf32>
    %c1_6 = arith.constant 1 : index
    %c0_7 = arith.constant 0 : index
    %7 = vector.load %arg25[%c1_6, %c0_7] : memref<16x32xf32, #tpu.memory_space<vmem>>, vector<1x32xf32>
    tpu.vector_store %arg25[%c1_6, %c0_7], %6 {strides = array<i32>} : memref<16x32xf32, #tpu.memory_space<vmem>>, vector<1x32xf32>,
    %c0_8 = arith.constant 0 : index
    %c2 = arith.constant 2 : index
    %8 = memref.load %arg0[%c0_8, %c2] : memref<2x8xi32, #tpu.memory_space<smem>>
    %9 = arith.index_cast %8 : i32 to index
    %c0_9 = arith.constant 0 : index
    %10 = vector.load %arg3[%9, %c0_9] : memref<100x32xf32, #tpu.memory_space<vmem>>, vector<1x32xf32>
    %c2_10 = arith.constant 2 : index
    %c0_11 = arith.constant 0 : index
    %11 = vector.load %arg25[%c2_10, %c0_11] : memref<16x32xf32, #tpu.memory_space<vmem>>, vector<1x32xf32>
    tpu.vector_store %arg25[%c2_10, %c0_11], %10 {strides = array<i32>} : memref<16x32xf32, #tpu.memory_space<vmem>>, vector<1x32xf32>,
    %c0_12 = arith.constant 0 : index
    %c3 = arith.constant 3 : index
    %12 = memref.load %arg0[%c0_12, %c3] : memref<2x8xi32, #tpu.memory_space<smem>>
    %13 = arith.index_cast %12 : i32 to index
    %c0_13 = arith.constant 0 : index
    %14 = vector.load %arg3[%13, %c0_13] : memref<100x32xf32, #tpu.memory_space<vmem>>, vector<1x32xf32>
    %c3_14 = arith.constant 3 : index
    %c0_15 = arith.constant 0 : index
    %15 = vector.load %arg25[%c3_14, %c0_15] : memref<16x32xf32, #tpu.memory_space<vmem>>, vector<1x32xf32>
    tpu.vector_store %arg25[%c3_14, %c0_15], %14 {strides = array<i32>} : memref<16x32xf32, #tpu.memory_space<vmem>>, vector<1x32xf32>,
    %c0_16 = arith.constant 0 : index
    %c4 = arith.constant 4 : index
    %16 = memref.load %arg0[%c0_16, %c4] : memref<2x8xi32, #tpu.memory_space<smem>>
    %17 = arith.index_cast %16 : i32 to index
    %c0_17 = arith.constant 0 : index
    %18 = vector.load %arg3[%17, %c0_17] : memref<100x32xf32, #tpu.memory_space<vmem>>, vector<1x32xf32>
    %c4_18 = arith.constant 4 : index
    %c0_19 = arith.constant 0 : index
    %19 = vector.load %arg25[%c4_18, %c0_19] : memref<16x32xf32, #tpu.memory_space<vmem>>, vector<1x32xf32>
    tpu.vector_store %arg25[%c4_18, %c0_19], %18 {strides = array<i32>} : memref<16x32xf32, #tpu.memory_space<vmem>>, vector<1x32xf32>,
    %c0_20 = arith.constant 0 : index
    %c5 = arith.constant 5 : index
    %20 = memref.load %arg0[%c0_20, %c5] : memref<2x8xi32, #tpu.memory_space<smem>>
    %21 = arith.index_cast %20 : i32 to index
    %c0_21 = arith.constant 0 : index
    %22 = vector.load %arg3[%21, %c0_21] : memref<100x32xf32, #tpu.memory_space<vmem>>, vector<1x32xf32>
    %c5_22 = arith.constant 5 : index
    %c0_23 = arith.constant 0 : index
    %23 = vector.load %arg25[%c5_22, %c0_23] : memref<16x32xf32, #tpu.memory_space<vmem>>, vector<1x32xf32>
    tpu.vector_store %arg25[%c5_22, %c0_23], %22 {strides = array<i32>} : memref<16x32xf32, #tpu.memory_space<vmem>>, vector<1x32xf32>,
    %c0_24 = arith.constant 0 : index
    %c6 = arith.constant 6 : index
    %24 = memref.load %arg0[%c0_24, %c6] : memref<2x8xi32, #tpu.memory_space<smem>>
    %25 = arith.index_cast %24 : i32 to index
    %c0_25 = arith.constant 0 : index
    %26 = vector.load %arg3[%25, %c0_25] : memref<100x32xf32, #tpu.memory_space<vmem>>, vector<1x32xf32>
    %c6_26 = arith.constant 6 : index
    %c0_27 = arith.constant 0 : index
    %27 = vector.load %arg25[%c6_26, %c0_27] : memref<16x32xf32, #tpu.memory_space<vmem>>, vector<1x32xf32>
    tpu.vector_store %arg25[%c6_26, %c0_27], %26 {strides = array<i32>} : memref<16x32xf32, #tpu.memory_space<vmem>>, vector<1x32xf32>,
    %c0_28 = arith.constant 0 : index
    %c7 = arith.constant 7 : index
    %28 = memref.load %arg0[%c0_28, %c7] : memref<2x8xi32, #tpu.memory_space<smem>>
    %29 = arith.index_cast %28 : i32 to index
    %c0_29 = arith.constant 0 : index
    %30 = vector.load %arg3[%29, %c0_29] : memref<100x32xf32, #tpu.memory_space<vmem>>, vector<1x32xf32>
    %c7_30 = arith.constant 7 : index
    %c0_31 = arith.constant 0 : index
    %31 = vector.load %arg25[%c7_30, %c0_31] : memref<16x32xf32, #tpu.memory_space<vmem>>, vector<1x32xf32>
    tpu.vector_store %arg25[%c7_30, %c0_31], %30 {strides = array<i32>} : memref<16x32xf32, #tpu.memory_space<vmem>>, vector<1x32xf32>,
    %c1_32 = arith.constant 1 : index
    %c0_33 = arith.constant 0 : index
    %32 = memref.load %arg0[%c1_32, %c0_33] : memref<2x8xi32, #tpu.memory_space<smem>>
    %33 = arith.index_cast %32 : i32 to index
    %c0_34 = arith.constant 0 : index
    %34 = vector.load %arg3[%33, %c0_34] : memref<100x32xf32, #tpu.memory_space<vmem>>, vector<1x32xf32>
    %c8 = arith.constant 8 : index
    %c0_35 = arith.constant 0 : index
    %35 = vector.load %arg25[%c8, %c0_35] : memref<16x32xf32, #tpu.memory_space<vmem>>, vector<1x32xf32>
    tpu.vector_store %arg25[%c8, %c0_35], %34 {strides = array<i32>} : memref<16x32xf32, #tpu.memory_space<vmem>>, vector<1x32xf32>,
    %c1_36 = arith.constant 1 : index
    %c1_37 = arith.constant 1 : index
    %36 = memref.load %arg0[%c1_36, %c1_37] : memref<2x8xi32, #tpu.memory_space<smem>>
    %37 = arith.index_cast %36 : i32 to index
    %c0_38 = arith.constant 0 : index
    %38 = vector.load %arg3[%37, %c0_38] : memref<100x32xf32, #tpu.memory_space<vmem>>, vector<1x32xf32>
    %c9 = arith.constant 9 : index
    %c0_39 = arith.constant 0 : index
    %39 = vector.load %arg25[%c9, %c0_39] : memref<16x32xf32, #tpu.memory_space<vmem>>, vector<1x32xf32>
    tpu.vector_store %arg25[%c9, %c0_39], %38 {strides = array<i32>} : memref<16x32xf32, #tpu.memory_space<vmem>>, vector<1x32xf32>,
    %c1_40 = arith.constant 1 : index
    %c2_41 = arith.constant 2 : index
    %40 = memref.load %arg0[%c1_40, %c2_41] : memref<2x8xi32, #tpu.memory_space<smem>>
    %41 = arith.index_cast %40 : i32 to index
    %c0_42 = arith.constant 0 : index
    %42 = vector.load %arg3[%41, %c0_42] : memref<100x32xf32, #tpu.memory_space<vmem>>, vector<1x32xf32>
    %c10 = arith.constant 10 : index
    %c0_43 = arith.constant 0 : index
    %43 = vector.load %arg25[%c10, %c0_43] : memref<16x32xf32, #tpu.memory_space<vmem>>, vector<1x32xf32>
    tpu.vector_store %arg25[%c10, %c0_43], %42 {strides = array<i32>} : memref<16x32xf32, #tpu.memory_space<vmem>>, vector<1x32xf32>,
    %c1_44 = arith.constant 1 : index
    %c3_45 = arith.constant 3 : index
    %44 = memref.load %arg0[%c1_44, %c3_45] : memref<2x8xi32, #tpu.memory_space<smem>>
    %45 = arith.index_cast %44 : i32 to index
    %c0_46 = arith.constant 0 : index
    %46 = vector.load %arg3[%45, %c0_46] : memref<100x32xf32, #tpu.memory_space<vmem>>, vector<1x32xf32>
    %c11 = arith.constant 11 : index
    %c0_47 = arith.constant 0 : index
    %47 = vector.load %arg25[%c11, %c0_47] : memref<16x32xf32, #tpu.memory_space<vmem>>, vector<1x32xf32>
    tpu.vector_store %arg25[%c11, %c0_47], %46 {strides = array<i32>} : memref<16x32xf32, #tpu.memory_space<vmem>>, vector<1x32xf32>,
    %c1_48 = arith.constant 1 : index
    %c4_49 = arith.constant 4 : index
    %48 = memref.load %arg0[%c1_48, %c4_49] : memref<2x8xi32, #tpu.memory_space<smem>>
    %49 = arith.index_cast %48 : i32 to index
    %c0_50 = arith.constant 0 : index
    %50 = vector.load %arg3[%49, %c0_50] : memref<100x32xf32, #tpu.memory_space<vmem>>, vector<1x32xf32>
    %c12 = arith.constant 12 : index
    %c0_51 = arith.constant 0 : index
    %51 = vector.load %arg25[%c12, %c0_51] : memref<16x32xf32, #tpu.memory_space<vmem>>, vector<1x32xf32>
    tpu.vector_store %arg25[%c12, %c0_51], %50 {strides = array<i32>} : memref<16x32xf32, #tpu.memory_space<vmem>>, vector<1x32xf32>,
    %c1_52 = arith.constant 1 : index
    %c5_53 = arith.constant 5 : index
    %52 = memref.load %arg0[%c1_52, %c5_53] : memref<2x8xi32, #tpu.memory_space<smem>>
    %53 = arith.index_cast %52 : i32 to index
    %c0_54 = arith.constant 0 : index
    %54 = vector.load %arg3[%53, %c0_54] : memref<100x32xf32, #tpu.memory_space<vmem>>, vector<1x32xf32>
    %c13 = arith.constant 13 : index
    %c0_55 = arith.constant 0 : index
    %55 = vector.load %arg25[%c13, %c0_55] : memref<16x32xf32, #tpu.memory_space<vmem>>, vector<1x32xf32>
    tpu.vector_store %arg25[%c13, %c0_55], %54 {strides = array<i32>} : memref<16x32xf32, #tpu.memory_space<vmem>>, vector<1x32xf32>,
    %c1_56 = arith.constant 1 : index
    %c6_57 = arith.constant 6 : index
    %56 = memref.load %arg0[%c1_56, %c6_57] : memref<2x8xi32, #tpu.memory_space<smem>>
    %57 = arith.index_cast %56 : i32 to index
    %c0_58 = arith.constant 0 : index
    %58 = vector.load %arg3[%57, %c0_58] : memref<100x32xf32, #tpu.memory_space<vmem>>, vector<1x32xf32>
    %c14 = arith.constant 14 : index
    %c0_59 = arith.constant 0 : index
    %59 = vector.load %arg25[%c14, %c0_59] : memref<16x32xf32, #tpu.memory_space<vmem>>, vector<1x32xf32>
    tpu.vector_store %arg25[%c14, %c0_59], %58 {strides = array<i32>} : memref<16x32xf32, #tpu.memory_space<vmem>>, vector<1x32xf32>,
    %c1_60 = arith.constant 1 : index
    %c7_61 = arith.constant 7 : index
    %60 = memref.load %arg0[%c1_60, %c7_61] : memref<2x8xi32, #tpu.memory_space<smem>>
    %61 = arith.index_cast %60 : i32 to index
    %c0_62 = arith.constant 0 : index
    %62 = vector.load %arg3[%61, %c0_62] : memref<100x32xf32, #tpu.memory_space<vmem>>, vector<1x32xf32>
    %c15 = arith.constant 15 : index
    %c0_63 = arith.constant 0 : index
    %63 = vector.load %arg25[%c15, %c0_63] : memref<16x32xf32, #tpu.memory_space<vmem>>, vector<1x32xf32>
    tpu.vector_store %arg25[%c15, %c0_63], %62 {strides = array<i32>} : memref<16x32xf32, #tpu.memory_space<vmem>>, vector<1x32xf32>,
    %c0_64 = arith.constant 0 : index
    %c0_65 = arith.constant 0 : index
    %64 = vector.load %arg4[%c0_64, %c0_65] : memref<16x32xf32, #tpu.memory_space<vmem>>, vector<8x32xf32>
    %65 = vector.shape_cast %64 : vector<8x32xf32> to vector<1x8x32xf32>
    %66 = vector.shape_cast %65 : vector<1x8x32xf32> to vector<1x8x32xf32>
    %67 = vector.broadcast %66 : vector<1x8x32xf32> to vector<2x8x32xf32>
    %68 = vector.shape_cast %67 : vector<2x8x32xf32> to vector<16x32xf32>
    %c0_66 = arith.constant 0 : index
    %c0_67 = arith.constant 0 : index
    %69 = vector.load %arg25[%c0_66, %c0_67] : memref<16x32xf32, #tpu.memory_space<vmem>>, vector<16x32xf32>
    %70 = arith.addf %69, %68 : vector<16x32xf32>
    %c0_68 = arith.constant 0 : index
    %c0_69 = arith.constant 0 : index
    %71 = vector.load %arg5[%c0_68, %c0_69] : memref<1x32xf32, #tpu.memory_space<vmem>>, vector<1x32xf32>
    %72 = vector.broadcast %71 : vector<1x32xf32> to vector<16x32xf32>
    %73 = arith.addf %70, %72 : vector<16x32xf32>
    %c0_70 = arith.constant 0 : index
    %c0_71 = arith.constant 0 : index
    %74 = vector.load %arg6[%c0_70, %c0_71] : memref<1x32xf32, #tpu.memory_space<vmem>>, vector<1x32xf32>
    %c0_72 = arith.constant 0 : index
    %c0_73 = arith.constant 0 : index
    %75 = vector.load %arg7[%c0_72, %c0_73] : memref<1x32xf32, #tpu.memory_space<vmem>>, vector<1x32xf32>
    %cst = arith.constant dense<0.000000e+00> : vector<16xf32>
    %76 = vector.multi_reduction <add>, %73, %cst [1] : vector<16x32xf32> to vector<16xf32>
    %77 = vector.shape_cast %76 : vector<16xf32> to vector<16x1xf32>
    %cst_74 = arith.constant 3.200000e+01 : f32
    %78 = vector.broadcast %cst_74 : f32 to vector<16x1xf32>
    %79 = arith.divf %77, %78 : vector<16x1xf32>
    %80 = arith.mulf %73, %73 : vector<16x32xf32>
    %cst_75 = arith.constant dense<0.000000e+00> : vector<16xf32>
    %81 = vector.multi_reduction <add>, %80, %cst_75 [1] : vector<16x32xf32> to vector<16xf32>
    %82 = vector.shape_cast %81 : vector<16xf32> to vector<16x1xf32>
    %cst_76 = arith.constant 3.200000e+01 : f32
    %83 = vector.broadcast %cst_76 : f32 to vector<16x1xf32>
    %84 = arith.divf %82, %83 : vector<16x1xf32>
    %85 = arith.mulf %79, %79 : vector<16x1xf32>
    %86 = arith.subf %84, %85 : vector<16x1xf32>
    %87 = vector.broadcast %79 : vector<16x1xf32> to vector<16x32xf32>
    %88 = arith.subf %73, %87 : vector<16x32xf32>
    %cst_77 = arith.constant 9.99999974E-6 : f32
    %89 = vector.broadcast %cst_77 : f32 to vector<16x1xf32>
    %90 = arith.addf %86, %89 : vector<16x1xf32>
    %91 = math.rsqrt %90 : vector<16x1xf32>
    %92 = vector.broadcast %91 : vector<16x1xf32> to vector<16x32xf32>
    %93 = arith.mulf %88, %92 : vector<16x32xf32>
    %94 = vector.broadcast %74 : vector<1x32xf32> to vector<16x32xf32>
    %95 = arith.mulf %93, %94 : vector<16x32xf32>
    %96 = vector.broadcast %75 : vector<1x32xf32> to vector<16x32xf32>
    %97 = arith.addf %95, %96 : vector<16x32xf32>
    %c0_78 = arith.constant 0 : index
    %c0_79 = arith.constant 0 : index
    %98 = vector.load %arg1[%c0_78, %c0_79] : memref<2x8xi32, #tpu.memory_space<vmem>>, vector<2x8xi32>
    %99 = arith.sitofp %98 : vector<2x8xi32> to vector<2x8xf32>
    %cst_80 = arith.constant 1.000000e+00 : f32
    %100 = vector.broadcast %cst_80 : f32 to vector<2x8xf32>
    %101 = arith.subf %99, %100 : vector<2x8xf32>
    %cst_81 = arith.constant 1.000000e+09 : f32
    %102 = vector.broadcast %cst_81 : f32 to vector<2x8xf32>
    %103 = arith.mulf %101, %102 : vector<2x8xf32>
    %104 = vector.shape_cast %103 : vector<2x8xf32> to vector<1x2x8xf32>
    %105 = vector.shape_cast %104 : vector<1x2x8xf32> to vector<1x2x8xf32>
    %106 = vector.broadcast %105 : vector<1x2x8xf32> to vector<4x2x8xf32>
    %107 = vector.shape_cast %106 : vector<4x2x8xf32> to vector<8x1x8xf32>
    %c0_82 = arith.constant 0 : index
    %c0_83 = arith.constant 0 : index
    %108 = vector.load %arg2[%c0_82, %c0_83] : memref<4x32xf32, #tpu.memory_space<vmem>>, vector<4x32xf32>
    %109 = vector.shape_cast %108 : vector<4x32xf32> to vector<4x1x1x32xf32>
    %c0_84 = arith.constant 0 : index
    %c0_85 = arith.constant 0 : index
    %c0_86 = arith.constant 0 : index
    %110 = vector.load %arg8[%c0_84, %c0_85, %c0_86] : memref<2x32x96xf32, #tpu.memory_space<vmem>>, vector<1x32x96xf32>
    %111 = vector.shape_cast %110 : vector<1x32x96xf32> to vector<32x96xf32>
    %cst_87 = arith.constant dense<0.000000e+00> : vector<16x96xf32>
    %112 = tpu.matmul %97, %111, %cst_87 {dimension_numbers = #tpu.dot_dimension_numbers<[1], [0], [0], [1], [0, 0, 1, 1], [], []>} : vector<16x32xf32>, vector<32x96xf32>, vector<16x96xf32> -> vector<16x96xf32>
    %c0_88 = arith.constant 0 : index
    %c0_89 = arith.constant 0 : index
    %c0_90 = arith.constant 0 : index
    %113 = vector.load %arg9[%c0_88, %c0_89, %c0_90] : memref<2x1x96xf32, #tpu.memory_space<vmem>>, vector<1x1x96xf32>
    %114 = vector.shape_cast %113 : vector<1x1x96xf32> to vector<1x96xf32>
    %115 = vector.broadcast %114 : vector<1x96xf32> to vector<16x96xf32>
    %116 = arith.addf %112, %115 : vector<16x96xf32>
    %117 = vector.extract_strided_slice %116 {offsets = [0, 0], sizes = [16, 32], strides = [1, 1]} : vector<16x96xf32> to vector<16x32xf32>
    %118 = vector.shape_cast %117 : vector<16x32xf32> to vector<2x8x32xf32>
    %119 = vector.extract_strided_slice %116 {offsets = [0, 32], sizes = [16, 32], strides = [1, 1]} : vector<16x96xf32> to vector<16x32xf32>
    %120 = vector.shape_cast %119 : vector<16x32xf32> to vector<2x8x32xf32>
    %121 = vector.extract_strided_slice %116 {offsets = [0, 64], sizes = [16, 32], strides = [1, 1]} : vector<16x96xf32> to vector<16x32xf32>
    %122 = vector.shape_cast %121 : vector<16x32xf32> to vector<2x8x32xf32>
    %123 = vector.shape_cast %118 : vector<2x8x32xf32> to vector<1x2x8x32xf32>
    %124 = vector.broadcast %123 : vector<1x2x8x32xf32> to vector<4x2x8x32xf32>
    %125 = vector.broadcast %109 : vector<4x1x1x32xf32> to vector<4x2x8x32xf32>
    %126 = arith.mulf %124, %125 : vector<4x2x8x32xf32>
    %127 = vector.shape_cast %126 : vector<4x2x8x32xf32> to vector<8x8x32xf32>
    %128 = vector.shape_cast %120 : vector<2x8x32xf32> to vector<1x2x8x32xf32>
    %129 = vector.shape_cast %128 : vector<1x2x8x32xf32> to vector<1x2x8x32xf32>
    %130 = vector.broadcast %129 : vector<1x2x8x32xf32> to vector<4x2x8x32xf32>
    %131 = vector.shape_cast %130 : vector<4x2x8x32xf32> to vector<8x8x32xf32>
    %132 = vector.shape_cast %122 : vector<2x8x32xf32> to vector<1x2x8x32xf32>
    %133 = vector.broadcast %132 : vector<1x2x8x32xf32> to vector<4x2x8x32xf32>
    %134 = vector.broadcast %109 : vector<4x1x1x32xf32> to vector<4x2x8x32xf32>
    %135 = arith.mulf %133, %134 : vector<4x2x8x32xf32>
    %136 = vector.shape_cast %135 : vector<4x2x8x32xf32> to vector<8x8x32xf32>
    %cst_91 = arith.constant dense<0.000000e+00> : vector<8x8x8xf32>
    %137 = tpu.matmul %127, %131, %cst_91 {dimension_numbers = #tpu.dot_dimension_numbers<[2], [2], [1], [1], [0, 0, 0, 1, 1, 1], [0], [0]>} : vector<8x8x32xf32>, vector<8x8x32xf32>, vector<8x8x8xf32> -> vector<8x8x8xf32>
    %138 = vector.broadcast %107 : vector<8x1x8xf32> to vector<8x8x8xf32>
    %139 = arith.addf %137, %138 : vector<8x8x8xf32>
    %cst_92 = arith.constant dense<0xFF800000> : vector<8x8xf32>
    %140 = vector.multi_reduction <maximumf>, %139, %cst_92 [2] : vector<8x8x8xf32> to vector<8x8xf32>
    %141 = vector.shape_cast %140 : vector<8x8xf32> to vector<8x8x1xf32>
    %142 = vector.broadcast %141 : vector<8x8x1xf32> to vector<8x8x8xf32>
    %143 = arith.subf %139, %142 : vector<8x8x8xf32>
    %144 = math.exp %143 : vector<8x8x8xf32>
    %cst_93 = arith.constant dense<0.000000e+00> : vector<8x8xf32>
    %145 = vector.multi_reduction <add>, %144, %cst_93 [2] : vector<8x8x8xf32> to vector<8x8xf32>
    %146 = vector.shape_cast %145 : vector<8x8xf32> to vector<8x8x1xf32>
    %147 = tpu.reciprocal %146 {approx = true} : vector<8x8x1xf32> -> vector<8x8x1xf32>
    %148 = vector.broadcast %147 : vector<8x8x1xf32> to vector<8x8x8xf32>
    %149 = arith.mulf %144, %148 : vector<8x8x8xf32>
    %cst_94 = arith.constant dense<0.000000e+00> : vector<8x8x32xf32>
    %150 = tpu.matmul %149, %136, %cst_94 {dimension_numbers = #tpu.dot_dimension_numbers<[2], [1], [1], [2], [0, 0, 0, 1, 1, 2], [0], [0]>} : vector<8x8x8xf32>, vector<8x8x32xf32>, vector<8x8x32xf32> -> vector<8x8x32xf32>
    %151 = vector.shape_cast %150 : vector<8x8x32xf32> to vector<4x16x32xf32>
    %cst_95 = arith.constant dense<0.000000e+00> : vector<16x32xf32>
    %152 = vector.multi_reduction <add>, %151, %cst_95 [0] : vector<4x16x32xf32> to vector<16x32xf32>
    %c0_96 = arith.constant 0 : index
    %c0_97 = arith.constant 0 : index
    %c0_98 = arith.constant 0 : index
    %153 = vector.load %arg10[%c0_96, %c0_97, %c0_98] : memref<2x32x32xf32, #tpu.memory_space<vmem>>, vector<1x32x32xf32>
    %154 = vector.shape_cast %153 : vector<1x32x32xf32> to vector<32x32xf32>
    %cst_99 = arith.constant dense<0.000000e+00> : vector<16x32xf32>
    %155 = tpu.matmul %152, %154, %cst_99 {dimension_numbers = #tpu.dot_dimension_numbers<[1], [0], [0], [1], [0, 0, 1, 1], [], []>} : vector<16x32xf32>, vector<32x32xf32>, vector<16x32xf32> -> vector<16x32xf32>
    %c0_100 = arith.constant 0 : index
    %c0_101 = arith.constant 0 : index
    %c0_102 = arith.constant 0 : index
    %156 = vector.load %arg11[%c0_100, %c0_101, %c0_102] : memref<2x1x32xf32, #tpu.memory_space<vmem>>, vector<1x1x32xf32>
    %157 = vector.shape_cast %156 : vector<1x1x32xf32> to vector<1x32xf32>
    %158 = vector.broadcast %157 : vector<1x32xf32> to vector<16x32xf32>
    %159 = arith.addf %155, %158 : vector<16x32xf32>
    %160 = arith.addf %159, %97 : vector<16x32xf32>
    %c0_103 = arith.constant 0 : index
    %c0_104 = arith.constant 0 : index
    %c0_105 = arith.constant 0 : index
    %161 = vector.load %arg12[%c0_103, %c0_104, %c0_105] : memref<2x1x32xf32, #tpu.memory_space<vmem>>, vector<1x1x32xf32>
    %162 = vector.shape_cast %161 : vector<1x1x32xf32> to vector<1x32xf32>
    %c0_106 = arith.constant 0 : index
    %c0_107 = arith.constant 0 : index
    %c0_108 = arith.constant 0 : index
    %163 = vector.load %arg13[%c0_106, %c0_107, %c0_108] : memref<2x1x32xf32, #tpu.memory_space<vmem>>, vector<1x1x32xf32>
    %164 = vector.shape_cast %163 : vector<1x1x32xf32> to vector<1x32xf32>
    %cst_109 = arith.constant dense<0.000000e+00> : vector<16xf32>
    %165 = vector.multi_reduction <add>, %160, %cst_109 [1] : vector<16x32xf32> to vector<16xf32>
    %166 = vector.shape_cast %165 : vector<16xf32> to vector<16x1xf32>
    %cst_110 = arith.constant 3.200000e+01 : f32
    %167 = vector.broadcast %cst_110 : f32 to vector<16x1xf32>
    %168 = arith.divf %166, %167 : vector<16x1xf32>
    %169 = arith.mulf %160, %160 : vector<16x32xf32>
    %cst_111 = arith.constant dense<0.000000e+00> : vector<16xf32>
    %170 = vector.multi_reduction <add>, %169, %cst_111 [1] : vector<16x32xf32> to vector<16xf32>
    %171 = vector.shape_cast %170 : vector<16xf32> to vector<16x1xf32>
    %cst_112 = arith.constant 3.200000e+01 : f32
    %172 = vector.broadcast %cst_112 : f32 to vector<16x1xf32>
    %173 = arith.divf %171, %172 : vector<16x1xf32>
    %174 = arith.mulf %168, %168 : vector<16x1xf32>
    %175 = arith.subf %173, %174 : vector<16x1xf32>
    %176 = vector.broadcast %168 : vector<16x1xf32> to vector<16x32xf32>
    %177 = arith.subf %160, %176 : vector<16x32xf32>
    %cst_113 = arith.constant 9.99999974E-6 : f32
    %178 = vector.broadcast %cst_113 : f32 to vector<16x1xf32>
    %179 = arith.addf %175, %178 : vector<16x1xf32>
    %180 = math.rsqrt %179 : vector<16x1xf32>
    %181 = vector.broadcast %180 : vector<16x1xf32> to vector<16x32xf32>
    %182 = arith.mulf %177, %181 : vector<16x32xf32>
    %183 = vector.broadcast %162 : vector<1x32xf32> to vector<16x32xf32>
    %184 = arith.mulf %182, %183 : vector<16x32xf32>
    %185 = vector.broadcast %164 : vector<1x32xf32> to vector<16x32xf32>
    %186 = arith.addf %184, %185 : vector<16x32xf32>
    %c0_114 = arith.constant 0 : index
    %c0_115 = arith.constant 0 : index
    %c0_116 = arith.constant 0 : index
    %187 = vector.load %arg14[%c0_114, %c0_115, %c0_116] : memref<2x32x64xf32, #tpu.memory_space<vmem>>, vector<1x32x64xf32>
    %188 = vector.shape_cast %187 : vector<1x32x64xf32> to vector<32x64xf32>
    %cst_117 = arith.constant dense<0.000000e+00> : vector<16x64xf32>
    %189 = tpu.matmul %186, %188, %cst_117 {dimension_numbers = #tpu.dot_dimension_numbers<[1], [0], [0], [1], [0, 0, 1, 1], [], []>} : vector<16x32xf32>, vector<32x64xf32>, vector<16x64xf32> -> vector<16x64xf32>
    %c0_118 = arith.constant 0 : index
    %c0_119 = arith.constant 0 : index
    %c0_120 = arith.constant 0 : index
    %190 = vector.load %arg15[%c0_118, %c0_119, %c0_120] : memref<2x1x64xf32, #tpu.memory_space<vmem>>, vector<1x1x64xf32>
    %191 = vector.shape_cast %190 : vector<1x1x64xf32> to vector<1x64xf32>
    %192 = vector.broadcast %191 : vector<1x64xf32> to vector<16x64xf32>
    %193 = arith.addf %189, %192 : vector<16x64xf32>
    %cst_121 = arith.constant 5.000000e-01 : f32
    %194 = vector.broadcast %cst_121 : f32 to vector<16x64xf32>
    %195 = arith.mulf %194, %193 : vector<16x64xf32>
    %cst_122 = arith.constant 4.471500e-02 : f32
    %196 = vector.broadcast %cst_122 : f32 to vector<16x64xf32>
    %197 = arith.mulf %196, %193 : vector<16x64xf32>
    %198 = arith.mulf %197, %193 : vector<16x64xf32>
    %199 = arith.mulf %198, %193 : vector<16x64xf32>
    %200 = arith.addf %193, %199 : vector<16x64xf32>
    %cst_123 = arith.constant 0.797884583 : f32
    %201 = vector.broadcast %cst_123 : f32 to vector<16x64xf32>
    %202 = arith.mulf %201, %200 : vector<16x64xf32>
    %203 = math.tanh %202 : vector<16x64xf32>
    %cst_124 = arith.constant 1.000000e+00 : f32
    %204 = vector.broadcast %cst_124 : f32 to vector<16x64xf32>
    %205 = arith.addf %204, %203 : vector<16x64xf32>
    %206 = arith.mulf %195, %205 : vector<16x64xf32>
    %c0_125 = arith.constant 0 : index
    %c0_126 = arith.constant 0 : index
    %c0_127 = arith.constant 0 : index
    %207 = vector.load %arg16[%c0_125, %c0_126, %c0_127] : memref<2x64x32xf32, #tpu.memory_space<vmem>>, vector<1x64x32xf32>
    %208 = vector.shape_cast %207 : vector<1x64x32xf32> to vector<64x32xf32>
    %cst_128 = arith.constant dense<0.000000e+00> : vector<16x32xf32>
    %209 = tpu.matmul %206, %208, %cst_128 {dimension_numbers = #tpu.dot_dimension_numbers<[1], [0], [0], [1], [0, 0, 1, 1], [], []>} : vector<16x64xf32>, vector<64x32xf32>, vector<16x32xf32> -> vector<16x32xf32>
    %c0_129 = arith.constant 0 : index
    %c0_130 = arith.constant 0 : index
    %c0_131 = arith.constant 0 : index
    %210 = vector.load %arg17[%c0_129, %c0_130, %c0_131] : memref<2x1x32xf32, #tpu.memory_space<vmem>>, vector<1x1x32xf32>
    %211 = vector.shape_cast %210 : vector<1x1x32xf32> to vector<1x32xf32>
    %212 = vector.broadcast %211 : vector<1x32xf32> to vector<16x32xf32>
    %213 = arith.addf %209, %212 : vector<16x32xf32>
    %214 = arith.addf %213, %186 : vector<16x32xf32>
    %c0_132 = arith.constant 0 : index
    %c0_133 = arith.constant 0 : index
    %c0_134 = arith.constant 0 : index
    %215 = vector.load %arg18[%c0_132, %c0_133, %c0_134] : memref<2x1x32xf32, #tpu.memory_space<vmem>>, vector<1x1x32xf32>
    %216 = vector.shape_cast %215 : vector<1x1x32xf32> to vector<1x32xf32>
    %c0_135 = arith.constant 0 : index
    %c0_136 = arith.constant 0 : index
    %c0_137 = arith.constant 0 : index
    %217 = vector.load %arg19[%c0_135, %c0_136, %c0_137] : memref<2x1x32xf32, #tpu.memory_space<vmem>>, vector<1x1x32xf32>
    %218 = vector.shape_cast %217 : vector<1x1x32xf32> to vector<1x32xf32>
    %cst_138 = arith.constant dense<0.000000e+00> : vector<16xf32>
    %219 = vector.multi_reduction <add>, %214, %cst_138 [1] : vector<16x32xf32> to vector<16xf32>
    %220 = vector.shape_cast %219 : vector<16xf32> to vector<16x1xf32>
    %cst_139 = arith.constant 3.200000e+01 : f32
    %221 = vector.broadcast %cst_139 : f32 to vector<16x1xf32>
    %222 = arith.divf %220, %221 : vector<16x1xf32>
    %223 = arith.mulf %214, %214 : vector<16x32xf32>
    %cst_140 = arith.constant dense<0.000000e+00> : vector<16xf32>
    %224 = vector.multi_reduction <add>, %223, %cst_140 [1] : vector<16x32xf32> to vector<16xf32>
    %225 = vector.shape_cast %224 : vector<16xf32> to vector<16x1xf32>
    %cst_141 = arith.constant 3.200000e+01 : f32
    %226 = vector.broadcast %cst_141 : f32 to vector<16x1xf32>
    %227 = arith.divf %225, %226 : vector<16x1xf32>
    %228 = arith.mulf %222, %222 : vector<16x1xf32>
    %229 = arith.subf %227, %228 : vector<16x1xf32>
    %230 = vector.broadcast %222 : vector<16x1xf32> to vector<16x32xf32>
    %231 = arith.subf %214, %230 : vector<16x32xf32>
    %cst_142 = arith.constant 9.99999974E-6 : f32
    %232 = vector.broadcast %cst_142 : f32 to vector<16x1xf32>
    %233 = arith.addf %229, %232 : vector<16x1xf32>
    %234 = math.rsqrt %233 : vector<16x1xf32>
    %235 = vector.broadcast %234 : vector<16x1xf32> to vector<16x32xf32>
    %236 = arith.mulf %231, %235 : vector<16x32xf32>
    %237 = vector.broadcast %216 : vector<1x32xf32> to vector<16x32xf32>
    %238 = arith.mulf %236, %237 : vector<16x32xf32>
    %239 = vector.broadcast %218 : vector<1x32xf32> to vector<16x32xf32>
    %240 = arith.addf %238, %239 : vector<16x32xf32>
    %c1_143 = arith.constant 1 : index
    %c0_144 = arith.constant 0 : index
    %c0_145 = arith.constant 0 : index
    %241 = vector.load %arg8[%c1_143, %c0_144, %c0_145] : memref<2x32x96xf32, #tpu.memory_space<vmem>>, vector<1x32x96xf32>
    %242 = vector.shape_cast %241 : vector<1x32x96xf32> to vector<32x96xf32>
    %cst_146 = arith.constant dense<0.000000e+00> : vector<16x96xf32>
    %243 = tpu.matmul %240, %242, %cst_146 {dimension_numbers = #tpu.dot_dimension_numbers<[1], [0], [0], [1], [0, 0, 1, 1], [], []>} : vector<16x32xf32>, vector<32x96xf32>, vector<16x96xf32> -> vector<16x96xf32>
    %c1_147 = arith.constant 1 : index
    %c0_148 = arith.constant 0 : index
    %c0_149 = arith.constant 0 : index
    %244 = vector.load %arg9[%c1_147, %c0_148, %c0_149] : memref<2x1x96xf32, #tpu.memory_space<vmem>>, vector<1x1x96xf32>
    %245 = vector.shape_cast %244 : vector<1x1x96xf32> to vector<1x96xf32>
    %246 = vector.broadcast %245 : vector<1x96xf32> to vector<16x96xf32>
    %247 = arith.addf %243, %246 : vector<16x96xf32>
    %248 = vector.extract_strided_slice %247 {offsets = [0, 0], sizes = [16, 32], strides = [1, 1]} : vector<16x96xf32> to vector<16x32xf32>
    %249 = vector.shape_cast %248 : vector<16x32xf32> to vector<2x8x32xf32>
    %250 = vector.extract_strided_slice %247 {offsets = [0, 32], sizes = [16, 32], strides = [1, 1]} : vector<16x96xf32> to vector<16x32xf32>
    %251 = vector.shape_cast %250 : vector<16x32xf32> to vector<2x8x32xf32>
    %252 = vector.extract_strided_slice %247 {offsets = [0, 64], sizes = [16, 32], strides = [1, 1]} : vector<16x96xf32> to vector<16x32xf32>
    %253 = vector.shape_cast %252 : vector<16x32xf32> to vector<2x8x32xf32>
    %254 = vector.shape_cast %249 : vector<2x8x32xf32> to vector<1x2x8x32xf32>
    %255 = vector.broadcast %254 : vector<1x2x8x32xf32> to vector<4x2x8x32xf32>
    %256 = vector.broadcast %109 : vector<4x1x1x32xf32> to vector<4x2x8x32xf32>
    %257 = arith.mulf %255, %256 : vector<4x2x8x32xf32>
    %258 = vector.shape_cast %257 : vector<4x2x8x32xf32> to vector<8x8x32xf32>
    %259 = vector.shape_cast %251 : vector<2x8x32xf32> to vector<1x2x8x32xf32>
    %260 = vector.shape_cast %259 : vector<1x2x8x32xf32> to vector<1x2x8x32xf32>
    %261 = vector.broadcast %260 : vector<1x2x8x32xf32> to vector<4x2x8x32xf32>
    %262 = vector.shape_cast %261 : vector<4x2x8x32xf32> to vector<8x8x32xf32>
    %263 = vector.shape_cast %253 : vector<2x8x32xf32> to vector<1x2x8x32xf32>
    %264 = vector.broadcast %263 : vector<1x2x8x32xf32> to vector<4x2x8x32xf32>
    %265 = vector.broadcast %109 : vector<4x1x1x32xf32> to vector<4x2x8x32xf32>
    %266 = arith.mulf %264, %265 : vector<4x2x8x32xf32>
    %267 = vector.shape_cast %266 : vector<4x2x8x32xf32> to vector<8x8x32xf32>
    %cst_150 = arith.constant dense<0.000000e+00> : vector<8x8x8xf32>
    %268 = tpu.matmul %258, %262, %cst_150 {dimension_numbers = #tpu.dot_dimension_numbers<[2], [2], [1], [1], [0, 0, 0, 1, 1, 1], [0], [0]>} : vector<8x8x32xf32>, vector<8x8x32xf32>, vector<8x8x8xf32> -> vector<8x8x8xf32>
    %269 = vector.broadcast %107 : vector<8x1x8xf32> to vector<8x8x8xf32>
    %270 = arith.addf %268, %269 : vector<8x8x8xf32>
    %cst_151 = arith.constant dense<0xFF800000> : vector<8x8xf32>
    %271 = vector.multi_reduction <maximumf>, %270, %cst_151 [2] : vector<8x8x8xf32> to vector<8x8xf32>
    %272 = vector.shape_cast %271 : vector<8x8xf32> to vector<8x8x1xf32>
    %273 = vector.broadcast %272 : vector<8x8x1xf32> to vector<8x8x8xf32>
    %274 = arith.subf %270, %273 : vector<8x8x8xf32>
    %275 = math.exp %274 : vector<8x8x8xf32>
    %cst_152 = arith.constant dense<0.000000e+00> : vector<8x8xf32>
    %276 = vector.multi_reduction <add>, %275, %cst_152 [2] : vector<8x8x8xf32> to vector<8x8xf32>
    %277 = vector.shape_cast %276 : vector<8x8xf32> to vector<8x8x1xf32>
    %278 = tpu.reciprocal %277 {approx = true} : vector<8x8x1xf32> -> vector<8x8x1xf32>
    %279 = vector.broadcast %278 : vector<8x8x1xf32> to vector<8x8x8xf32>
    %280 = arith.mulf %275, %279 : vector<8x8x8xf32>
    %cst_153 = arith.constant dense<0.000000e+00> : vector<8x8x32xf32>
    %281 = tpu.matmul %280, %267, %cst_153 {dimension_numbers = #tpu.dot_dimension_numbers<[2], [1], [1], [2], [0, 0, 0, 1, 1, 2], [0], [0]>} : vector<8x8x8xf32>, vector<8x8x32xf32>, vector<8x8x32xf32> -> vector<8x8x32xf32>
    %282 = vector.shape_cast %281 : vector<8x8x32xf32> to vector<4x16x32xf32>
    %cst_154 = arith.constant dense<0.000000e+00> : vector<16x32xf32>
    %283 = vector.multi_reduction <add>, %282, %cst_154 [0] : vector<4x16x32xf32> to vector<16x32xf32>
    %c1_155 = arith.constant 1 : index
    %c0_156 = arith.constant 0 : index
    %c0_157 = arith.constant 0 : index
    %284 = vector.load %arg10[%c1_155, %c0_156, %c0_157] : memref<2x32x32xf32, #tpu.memory_space<vmem>>, vector<1x32x32xf32>
    %285 = vector.shape_cast %284 : vector<1x32x32xf32> to vector<32x32xf32>
    %cst_158 = arith.constant dense<0.000000e+00> : vector<16x32xf32>
    %286 = tpu.matmul %283, %285, %cst_158 {dimension_numbers = #tpu.dot_dimension_numbers<[1], [0], [0], [1], [0, 0, 1, 1], [], []>} : vector<16x32xf32>, vector<32x32xf32>, vector<16x32xf32> -> vector<16x32xf32>
    %c1_159 = arith.constant 1 : index
    %c0_160 = arith.constant 0 : index
    %c0_161 = arith.constant 0 : index
    %287 = vector.load %arg11[%c1_159, %c0_160, %c0_161] : memref<2x1x32xf32, #tpu.memory_space<vmem>>, vector<1x1x32xf32>
    %288 = vector.shape_cast %287 : vector<1x1x32xf32> to vector<1x32xf32>
    %289 = vector.broadcast %288 : vector<1x32xf32> to vector<16x32xf32>
    %290 = arith.addf %286, %289 : vector<16x32xf32>
    %291 = arith.addf %290, %240 : vector<16x32xf32>
    %c1_162 = arith.constant 1 : index
    %c0_163 = arith.constant 0 : index
    %c0_164 = arith.constant 0 : index
    %292 = vector.load %arg12[%c1_162, %c0_163, %c0_164] : memref<2x1x32xf32, #tpu.memory_space<vmem>>, vector<1x1x32xf32>
    %293 = vector.shape_cast %292 : vector<1x1x32xf32> to vector<1x32xf32>
    %c1_165 = arith.constant 1 : index
    %c0_166 = arith.constant 0 : index
    %c0_167 = arith.constant 0 : index
    %294 = vector.load %arg13[%c1_165, %c0_166, %c0_167] : memref<2x1x32xf32, #tpu.memory_space<vmem>>, vector<1x1x32xf32>
    %295 = vector.shape_cast %294 : vector<1x1x32xf32> to vector<1x32xf32>
    %cst_168 = arith.constant dense<0.000000e+00> : vector<16xf32>
    %296 = vector.multi_reduction <add>, %291, %cst_168 [1] : vector<16x32xf32> to vector<16xf32>
    %297 = vector.shape_cast %296 : vector<16xf32> to vector<16x1xf32>
    %cst_169 = arith.constant 3.200000e+01 : f32
    %298 = vector.broadcast %cst_169 : f32 to vector<16x1xf32>
    %299 = arith.divf %297, %298 : vector<16x1xf32>
    %300 = arith.mulf %291, %291 : vector<16x32xf32>
    %cst_170 = arith.constant dense<0.000000e+00> : vector<16xf32>
    %301 = vector.multi_reduction <add>, %300, %cst_170 [1] : vector<16x32xf32> to vector<16xf32>
    %302 = vector.shape_cast %301 : vector<16xf32> to vector<16x1xf32>
    %cst_171 = arith.constant 3.200000e+01 : f32
    %303 = vector.broadcast %cst_171 : f32 to vector<16x1xf32>
    %304 = arith.divf %302, %303 : vector<16x1xf32>
    %305 = arith.mulf %299, %299 : vector<16x1xf32>
    %306 = arith.subf %304, %305 : vector<16x1xf32>
    %307 = vector.broadcast %299 : vector<16x1xf32> to vector<16x32xf32>
    %308 = arith.subf %291, %307 : vector<16x32xf32>
    %cst_172 = arith.constant 9.99999974E-6 : f32
    %309 = vector.broadcast %cst_172 : f32 to vector<16x1xf32>
    %310 = arith.addf %306, %309 : vector<16x1xf32>
    %311 = math.rsqrt %310 : vector<16x1xf32>
    %312 = vector.broadcast %311 : vector<16x1xf32> to vector<16x32xf32>
    %313 = arith.mulf %308, %312 : vector<16x32xf32>
    %314 = vector.broadcast %293 : vector<1x32xf32> to vector<16x32xf32>
    %315 = arith.mulf %313, %314 : vector<16x32xf32>
    %316 = vector.broadcast %295 : vector<1x32xf32> to vector<16x32xf32>
    %317 = arith.addf %315, %316 : vector<16x32xf32>
    %c1_173 = arith.constant 1 : index
    %c0_174 = arith.constant 0 : index
    %c0_175 = arith.constant 0 : index
    %318 = vector.load %arg14[%c1_173, %c0_174, %c0_175] : memref<2x32x64xf32, #tpu.memory_space<vmem>>, vector<1x32x64xf32>
    %319 = vector.shape_cast %318 : vector<1x32x64xf32> to vector<32x64xf32>
    %cst_176 = arith.constant dense<0.000000e+00> : vector<16x64xf32>
    %320 = tpu.matmul %317, %319, %cst_176 {dimension_numbers = #tpu.dot_dimension_numbers<[1], [0], [0], [1], [0, 0, 1, 1], [], []>} : vector<16x32xf32>, vector<32x64xf32>, vector<16x64xf32> -> vector<16x64xf32>
    %c1_177 = arith.constant 1 : index
    %c0_178 = arith.constant 0 : index
    %c0_179 = arith.constant 0 : index
    %321 = vector.load %arg15[%c1_177, %c0_178, %c0_179] : memref<2x1x64xf32, #tpu.memory_space<vmem>>, vector<1x1x64xf32>
    %322 = vector.shape_cast %321 : vector<1x1x64xf32> to vector<1x64xf32>
    %323 = vector.broadcast %322 : vector<1x64xf32> to vector<16x64xf32>
    %324 = arith.addf %320, %323 : vector<16x64xf32>
    %cst_180 = arith.constant 5.000000e-01 : f32
    %325 = vector.broadcast %cst_180 : f32 to vector<16x64xf32>
    %326 = arith.mulf %325, %324 : vector<16x64xf32>
    %cst_181 = arith.constant 4.471500e-02 : f32
    %327 = vector.broadcast %cst_181 : f32 to vector<16x64xf32>
    %328 = arith.mulf %327, %324 : vector<16x64xf32>
    %329 = arith.mulf %328, %324 : vector<16x64xf32>
    %330 = arith.mulf %329, %324 : vector<16x64xf32>
    %331 = arith.addf %324, %330 : vector<16x64xf32>
    %cst_182 = arith.constant 0.797884583 : f32
    %332 = vector.broadcast %cst_182 : f32 to vector<16x64xf32>
    %333 = arith.mulf %332, %331 : vector<16x64xf32>
    %334 = math.tanh %333 : vector<16x64xf32>
    %cst_183 = arith.constant 1.000000e+00 : f32
    %335 = vector.broadcast %cst_183 : f32 to vector<16x64xf32>
    %336 = arith.addf %335, %334 : vector<16x64xf32>
    %337 = arith.mulf %326, %336 : vector<16x64xf32>
    %c1_184 = arith.constant 1 : index
    %c0_185 = arith.constant 0 : index
    %c0_186 = arith.constant 0 : index
    %338 = vector.load %arg16[%c1_184, %c0_185, %c0_186] : memref<2x64x32xf32, #tpu.memory_space<vmem>>, vector<1x64x32xf32>
    %339 = vector.shape_cast %338 : vector<1x64x32xf32> to vector<64x32xf32>
    %cst_187 = arith.constant dense<0.000000e+00> : vector<16x32xf32>
    %340 = tpu.matmul %337, %339, %cst_187 {dimension_numbers = #tpu.dot_dimension_numbers<[1], [0], [0], [1], [0, 0, 1, 1], [], []>} : vector<16x64xf32>, vector<64x32xf32>, vector<16x32xf32> -> vector<16x32xf32>
    %c1_188 = arith.constant 1 : index
    %c0_189 = arith.constant 0 : index
    %c0_190 = arith.constant 0 : index
    %341 = vector.load %arg17[%c1_188, %c0_189, %c0_190] : memref<2x1x32xf32, #tpu.memory_space<vmem>>, vector<1x1x32xf32>
    %342 = vector.shape_cast %341 : vector<1x1x32xf32> to vector<1x32xf32>
    %343 = vector.broadcast %342 : vector<1x32xf32> to vector<16x32xf32>
    %344 = arith.addf %340, %343 : vector<16x32xf32>
    %345 = arith.addf %344, %317 : vector<16x32xf32>
    %c1_191 = arith.constant 1 : index
    %c0_192 = arith.constant 0 : index
    %c0_193 = arith.constant 0 : index
    %346 = vector.load %arg18[%c1_191, %c0_192, %c0_193] : memref<2x1x32xf32, #tpu.memory_space<vmem>>, vector<1x1x32xf32>
    %347 = vector.shape_cast %346 : vector<1x1x32xf32> to vector<1x32xf32>
    %c1_194 = arith.constant 1 : index
    %c0_195 = arith.constant 0 : index
    %c0_196 = arith.constant 0 : index
    %348 = vector.load %arg19[%c1_194, %c0_195, %c0_196] : memref<2x1x32xf32, #tpu.memory_space<vmem>>, vector<1x1x32xf32>
    %349 = vector.shape_cast %348 : vector<1x1x32xf32> to vector<1x32xf32>
    %cst_197 = arith.constant dense<0.000000e+00> : vector<16xf32>
    %350 = vector.multi_reduction <add>, %345, %cst_197 [1] : vector<16x32xf32> to vector<16xf32>
    %351 = vector.shape_cast %350 : vector<16xf32> to vector<16x1xf32>
    %cst_198 = arith.constant 3.200000e+01 : f32
    %352 = vector.broadcast %cst_198 : f32 to vector<16x1xf32>
    %353 = arith.divf %351, %352 : vector<16x1xf32>
    %354 = arith.mulf %345, %345 : vector<16x32xf32>
    %cst_199 = arith.constant dense<0.000000e+00> : vector<16xf32>
    %355 = vector.multi_reduction <add>, %354, %cst_199 [1] : vector<16x32xf32> to vector<16xf32>
    %356 = vector.shape_cast %355 : vector<16xf32> to vector<16x1xf32>
    %cst_200 = arith.constant 3.200000e+01 : f32
    %357 = vector.broadcast %cst_200 : f32 to vector<16x1xf32>
    %358 = arith.divf %356, %357 : vector<16x1xf32>
    %359 = arith.mulf %353, %353 : vector<16x1xf32>
    %360 = arith.subf %358, %359 : vector<16x1xf32>
    %361 = vector.broadcast %353 : vector<16x1xf32> to vector<16x32xf32>
    %362 = arith.subf %345, %361 : vector<16x32xf32>
    %cst_201 = arith.constant 9.99999974E-6 : f32
    %363 = vector.broadcast %cst_201 : f32 to vector<16x1xf32>
    %364 = arith.addf %360, %363 : vector<16x1xf32>
    %365 = math.rsqrt %364 : vector<16x1xf32>
    %366 = vector.broadcast %365 : vector<16x1xf32> to vector<16x32xf32>
    %367 = arith.mulf %362, %366 : vector<16x32xf32>
    %368 = vector.broadcast %347 : vector<1x32xf32> to vector<16x32xf32>
    %369 = arith.mulf %367, %368 : vector<16x32xf32>
    %370 = vector.broadcast %349 : vector<1x32xf32> to vector<16x32xf32>
    %371 = arith.addf %369, %370 : vector<16x32xf32>
    %372 = vector.shape_cast %371 : vector<16x32xf32> to vector<2x8x32xf32>
    %373 = vector.extract_strided_slice %372 {offsets = [0, 0, 0], sizes = [2, 1, 32], strides = [1, 1, 1]} : vector<2x8x32xf32> to vector<2x1x32xf32>
    %374 = vector.shape_cast %373 : vector<2x1x32xf32> to vector<2x32xf32>
    %c0_202 = arith.constant 0 : index
    %c0_203 = arith.constant 0 : index
    %375 = vector.load %arg20[%c0_202, %c0_203] : memref<32x32xf32, #tpu.memory_space<vmem>>, vector<32x32xf32>
    %cst_204 = arith.constant dense<0.000000e+00> : vector<2x32xf32>
    %376 = tpu.matmul %374, %375, %cst_204 {dimension_numbers = #tpu.dot_dimension_numbers<[1], [0], [0], [1], [0, 0, 1, 1], [], []>} : vector<2x32xf32>, vector<32x32xf32>, vector<2x32xf32> -> vector<2x32xf32>
    %c0_205 = arith.constant 0 : index
    %c0_206 = arith.constant 0 : index
    %377 = vector.load %arg21[%c0_205, %c0_206] : memref<1x32xf32, #tpu.memory_space<vmem>>, vector<1x32xf32>
    %378 = vector.broadcast %377 : vector<1x32xf32> to vector<2x32xf32>
    %379 = arith.addf %376, %378 : vector<2x32xf32>
    %380 = math.tanh %379 : vector<2x32xf32>
    %c0_207 = arith.constant 0 : index
    %c0_208 = arith.constant 0 : index
    %381 = vector.load %arg22[%c0_207, %c0_208] : memref<32x1xf32, #tpu.memory_space<vmem>>, vector<32x1xf32>
    %cst_209 = arith.constant dense<0.000000e+00> : vector<2x1xf32>
    %382 = tpu.matmul %380, %381, %cst_209 {dimension_numbers = #tpu.dot_dimension_numbers<[1], [0], [0], [1], [0, 0, 1, 1], [], []>} : vector<2x32xf32>, vector<32x1xf32>, vector<2x1xf32> -> vector<2x1xf32>
    %c0_210 = arith.constant 0 : index
    %c0_211 = arith.constant 0 : index
    %383 = vector.load %arg23[%c0_210, %c0_211] : memref<1x1xf32, #tpu.memory_space<vmem>>, vector<1x1xf32>
    %384 = vector.broadcast %383 : vector<1x1xf32> to vector<2x1xf32>
    %385 = arith.addf %382, %384 : vector<2x1xf32>
    %c0_212 = arith.constant 0 : index
    %c0_213 = arith.constant 0 : index
    %386 = vector.load %arg24[%c0_212, %c0_213] : memref<2x1xf32, #tpu.memory_space<vmem>>, vector<2x1xf32>
    tpu.vector_store %arg24[%c0_212, %c0_213], %385 {strides = array<i32>} : memref<2x1xf32, #tpu.memory_space<vmem>>, vector<2x1xf32>,
    return
  }
}

</mosaic_0001>

<bundles_post_ra>
// kernel: bertmoji_forward.1
= control target key start
LH: loop header
LB: loop body
LE: loop exit
PB: predicated region body
PF: predicated region fallthrough
CT: control target
= control target key end

     0   :  { %s3082_s0 = inlined_call_operand.vmem [shape: s32[2,8], index: 0, kind: input, shape index: {}]   ;;  %s3083_s1 = inlined_call_operand.vmem [shape: s32[2,8], index: 1, kind: input, shape index: {}]   ;;  %s3084_s2 = inlined_call_operand.vmem [shape: f32[4,32], index: 2, kind: input, shape index: {}]   ;;  %s3085_s3 = inlined_call_operand.vmem [shape: f32[100,32], index: 3, kind: input, shape index: {}]   ;;  %s3086_s4 = inlined_call_operand.vmem [shape: f32[16,32], index: 4, kind: input, shape index: {}]   ;;  %s3087_s5 = inlined_call_operand.vmem [shape: f32[1,32], index: 5, kind: input, shape index: {}]   ;;  %s3088_s6 = inlined_call_operand.vmem [shape: f32[1,32], index: 6, kind: input, shape index: {}]   ;;  %s3089_s7 = inlined_call_operand.vmem [shape: f32[1,32], index: 7, kind: input, shape index: {}]   ;;  %s3090_s8 = inlined_call_operand.vmem [shape: f32[2,32,96], index: 8, kind: input, shape index: {}]   ;;  %s3091_s9 = inlined_call_operand.vmem [shape: f32[2,1,96], index: 9, kind: input, shape index: {}]   ;;  %s3092_s10 = inlined_call_operand.vmem [shape: f32[2,32,32], index: 10, kind: input, shape index: {}]   ;;  %s3093_s11 = inlined_call_operand.vmem [shape: f32[2,1,32], index: 11, kind: input, shape index: {}]   ;;  %s3094_s12 = inlined_call_operand.vmem [shape: f32[2,1,32], index: 12, kind: input, shape index: {}]   ;;  %s3095_s13 = inlined_call_operand.vmem [shape: f32[2,1,32], index: 13, kind: input, shape index: {}]   ;;  %s3096_s14 = inlined_call_operand.vmem [shape: f32[2,32,64], index: 14, kind: input, shape index: {}]   ;;  %s3097_s15 = inlined_call_operand.vmem [shape: f32[2,1,64], index: 15, kind: input, shape index: {}]   ;;  %s3098_s16 = inlined_call_operand.vmem [shape: f32[2,64,32], index: 16, kind: input, shape index: {}]   ;;  %s3099_s17 = inlined_call_operand.vmem [shape: f32[2,1,32], index: 17, kind: input, shape index: {}]   ;;  %s3100_s18 = inlined_call_operand.vmem [shape: f32[2,1,32], index: 18, kind: input, shape index: {}]   ;;  %s3101_s19 = inlined_call_operand.vmem [shape: f32[2,1,32], index: 19, kind: input, shape index: {}]   ;;  %s3102_s20 = inlined_call_operand.vmem [shape: f32[32,32], index: 20, kind: input, shape index: {}]   ;;  %s3103_s21 = inlined_call_operand.vmem [shape: f32[1,32], index: 21, kind: input, shape index: {}]   ;;  %s3104_s22 = inlined_call_operand.vmem [shape: f32[32,1], index: 22, kind: input, shape index: {}]   ;;  %s3105_s23 = inlined_call_operand.<no memory space> [shape: f32[1,1], index: 23, kind: input, shape index: {}]   ;;  %s3106_s24 = inlined_call_operand.vmem [shape: f32[2,1], index: 24, kind: output, shape index: {}]  }
   0x1   :  { %3111 = sst [smem:[#allocation7_spill]] %s3082_s0  ;;  %v29_v0 = vstv %s3105_s23 }
   0x2   :  { %3112 = sst [smem:[#allocation8_spill]] %s3083_s1  ;;  %30 = vst [vmem:[#allocation3] sm:$0x1] %v29_v0 }
   0x3   :  { %3113 = sst [smem:[#allocation9_spill]] %s3084_s2 }
   0x4   :  { %3114 = sst [smem:[#allocation10_spill]] %s3085_s3 }
   0x5   :  { %3115 = sst [smem:[#allocation11_spill]] %s3086_s4 }
   0x6   :  { %3116 = sst [smem:[#allocation12_spill]] %s3087_s5 }
   0x7   :  { %3117 = sst [smem:[#allocation13_spill]] %s3088_s6 }
   0x8   :  { %3118 = sst [smem:[#allocation14_spill]] %s3089_s7 }
   0x9   :  { %3119 = sst [smem:[#allocation15_spill]] %s3090_s8 }
   0xa   :  { %3120 = sst [smem:[#allocation16_spill]] %s3102_s20 }
   0xb   :  { %3121 = sst [smem:[#allocation17_spill]] %s3103_s21 }
   0xc   :  { %3122 = sst [smem:[#allocation18_spill]] %s3104_s22 }
   0xd   :  { %3123 = sst [smem:[#allocation19_spill]] %s3106_s24 }
   0xe   :  { %31 = vsyncpa [#allocation5], 0  ;;  %s3124_s6 = sld [smem:[#allocation7_spill]]  ;;  %s2294_s29 = smov [#allocation4]  }
  0x14   :  { %s37_s2 = sshll.u32 %s3124_s6, 4  ;;  %s38_s2 = int_to_ptr.vmem [resolvable:$true] %s37_s2 }
  0x15   :  { %40 = dma.vmem_to_smem %s38_s2, 32, %s2294_s29, [#allocation5]  }
  0x16   :  { %2292 = dma.done.wait [#allocation5], 32  }
  0x17   :  { %2293 = vsyncadd [#allocation5], 4294967264 }
  0x18   :  { %91 = sfence }
  0x19   :  { %s92_s0 = sld [smem:[#allocation4]]  ;;  %vm95_vm0 = vcmask 253952   ;;  %vm170_vm1 = vcmask 261120   ;;  %v2295_v31 = vmov 32.0   ;;  %vm518_vm9 = vcmask 64512  }
  0x1a   :  { %s2019_s7 = sld [smem:[#allocation4 + $0x1]]  ;;  %2184 = vrcp.f32 %v2295_v31 }
  0x1b   :  { %s2020_s30 = sld [smem:[#allocation4 + $0x2]] }
  0x1c   :  { %s2021_s3 = sld [smem:[#allocation4 + $0x3]] }
  0x1d   :  { %s2022_s25 = sld [smem:[#allocation4 + $0x4]] }
  0x1e   :  { %s2023_s8 = sld [smem:[#allocation4 + $0x5]] }
  0x1f   :  { %s3125_s1 = sld [smem:[#allocation10_spill]] }
  0x20   :  { %s2024_s26 = sld [smem:[#allocation4 + $0x6]]  ;;  %v2185_v32 = vpop.eup %2184 }
  0x21   :  { %s2025_s2 = sld [smem:[#allocation4 + $0x7]]  ;;  %v178_v33 = vmul.f32 32.0, %v2185_v32  ;;  %vm182_vm2 = vweird.f32 %v2185_v32 }
  0x22   :  { %s2026_s22 = sld [smem:[#allocation4 + $0x80]] }
  0x23   :  { %s2029_s29 = sld [smem:[#allocation4 + $0x83]]  ;;  %v179_v34 = vsub.f32 1.0, %v178_v33 }
  0x24   :  { %s3126_s20 = sld [smem:[#allocation11_spill]] }
  0x25   :  { %s93_s5 = scalar_lea.vmem %s3125_s1, %s92_s0  ;;  %s98_s6 = scalar_lea.vmem %s3125_s1, %s2019_s7  ;;  %v180_v35 = vmul.f32 %v2185_v32, %v179_v34 }
  0x26   :  { %v94_v1 = vld [vmem:[%s93_s5] sm:$0x1]  ;;  %s102_s21 = scalar_lea.vmem %s3125_s1, %s2020_s30  ;;  %s106_s4 = scalar_lea.vmem %s3125_s1, %s2021_s3 }
  0x27   :  { %96 = vst.msk [vmem:[#allocation2] sm:$0x1] %vm95_vm0, %v94_v1  ;;  %v99_v2 = vld [vmem:[%s98_s6] sm:$0x1]  ;;  %s2027_s5 = sld [smem:[#allocation4 + $0x81]]  ;;  %s110_s28 = scalar_lea.vmem %s3125_s1, %s2022_s25  ;;  %v181_v36 = vadd.f32 %v2185_v32, %v180_v35 }
  0x28   :  { %100 = vst.msk [vmem:[#allocation2 + $0x1] sm:$0x1] %vm95_vm0, %v99_v2  ;;  %v103_v3 = vld [vmem:[%s102_s21] sm:$0x1]  ;;  %s2028_s6 = sld [smem:[#allocation4 + $0x82]]  ;;  %s114_s21 = scalar_lea.vmem %s3125_s1, %s2023_s8 }
  0x29   :  { %104 = vst.msk [vmem:[#allocation2 + $0x2] sm:$0x1] %vm95_vm0, %v103_v3  ;;  %v107_v4 = vld [vmem:[%s106_s4] sm:$0x1]  ;;  %s118_s0 = scalar_lea.vmem %s3125_s1, %s2024_s26  ;;  %s2030_s4 = sld [smem:[#allocation4 + $0x84]]  ;;  %v2519_v40 = vsel %vm182_vm2, %v2185_v32, %v181_v36 }
  0x2a   :  { %108 = vst.msk [vmem:[#allocation2 + $0x3] sm:$0x1] %vm95_vm0, %v107_v4  ;;  %v111_v5 = vld [vmem:[%s110_s28] sm:$0x1]  ;;  %s122_s27 = scalar_lea.vmem %s3125_s1, %s2025_s2  ;;  %s2031_s28 = sld [smem:[#allocation4 + $0x85]] }
  0x2b   :  { %112 = vst.msk [vmem:[#allocation2 + $0x4] sm:$0x1] %vm95_vm0, %v111_v5  ;;  %v115_v6 = vld [vmem:[%s114_s21] sm:$0x1]  ;;  %s126_s30 = scalar_lea.vmem %s3125_s1, %s2026_s22  ;;  %s2032_s21 = sld [smem:[#allocation4 + $0x86]] }
  0x2c   :  { %116 = vst.msk [vmem:[#allocation2 + $0x5] sm:$0x1] %vm95_vm0, %v115_v6  ;;  %v119_v7 = vld [vmem:[%s118_s0] sm:$0x1]  ;;  %s2033_s0 = sld [smem:[#allocation4 + $0x87]]  ;;  %s138_s8 = scalar_lea.vmem %s3125_s1, %s2029_s29 }
  0x2d   :  { %120 = vst.msk [vmem:[#allocation2 + $0x6] sm:$0x1] %vm95_vm0, %v119_v7  ;;  %v123_v8 = vld [vmem:[%s122_s27] sm:$0x1]  ;;  %s130_s23 = scalar_lea.vmem %s3125_s1, %s2027_s5  ;;  %s3127_s2 = sld [smem:[#allocation12_spill]] }
  0x2e   :  { %124 = vst.msk [vmem:[#allocation2 + $0x7] sm:$0x1] %vm95_vm0, %v123_v8  ;;  %v127_v9 = vld [vmem:[%s126_s30] sm:$0x1]  ;;  %s134_s7 = scalar_lea.vmem %s3125_s1, %s2028_s6  ;;  %s3129_s25 = sld [smem:[#allocation9_spill]] }
  0x2f   :  { %128 = vst.msk [vmem:[#allocation2 + $0x8] sm:$0x1] %vm95_vm0, %v127_v9  ;;  %v131_v10 = vld [vmem:[%s130_s23] sm:$0x1]  ;;  %s142_s3 = scalar_lea.vmem %s3125_s1, %s2030_s4  ;;  %s2296_s29 = smov 64  }
  0x30   :  { %132 = vst.msk [vmem:[#allocation2 + $0x9] sm:$0x1] %vm95_vm0, %v131_v10  ;;  %v135_v11 = vld [vmem:[%s134_s7] sm:$0x1]  ;;  %s146_s7 = scalar_lea.vmem %s3125_s1, %s2031_s28  ;;  %s3130_s22 = sld [smem:[#allocation13_spill]] }
  0x31   :  { %v157_v12 = vld [vmem:[%s3126_s20] sm:$0xff]  ;;  %136 = vst.msk [vmem:[#allocation2 + $0xa] sm:$0x1] %vm95_vm0, %v135_v11  ;;  %s150_s27 = scalar_lea.vmem %s3125_s1, %s2032_s21  ;;  %s3128_s21 = sld [smem:[#allocation15_spill]] }
  0x32   :  { %v139_v13 = vld [vmem:[%s138_s8] sm:$0x1]  ;;  %s154_s24 = scalar_lea.vmem %s3125_s1, %s2033_s0  ;;  %s3131_s8 = sld [smem:[#allocation14_spill]] }
  0x33   :  { %v2163_v14 = vld [vmem:[%s3127_s2] ss:$0 sm:$0xff]  ;;  %140 = vst.msk [vmem:[#allocation2 + $0xb] sm:$0x1] %vm95_vm0, %v139_v13  ;;  %s2297_s28 = smov 96   ;;  %s3132_s5 = sld [smem:[#allocation8_spill]] }
  0x34   :  { %v143_v15 = vld [vmem:[%s142_s3] sm:$0x1]  ;;  %s3133_s0 = sld [smem:[#allocation16_spill]] }
  0x35   :  { %144 = vst.msk [vmem:[#allocation2 + $0xc] sm:$0x1] %vm95_vm0, %v143_v15  ;;  %v147_v16 = vld [vmem:[%s146_s7] sm:$0x1] }
  0x36   :  { %148 = vst.msk [vmem:[#allocation2 + $0xd] sm:$0x1] %vm95_vm0, %v147_v16  ;;  %v151_v17 = vld [vmem:[%s150_s27] sm:$0x1]  ;;  %s3135_s27 = sld [smem:[#allocation17_spill]] }
  0x37   :  { %v158_v18 = vld [vmem:[#allocation2] sm:$0xff]  ;;  %152 = vst.msk [vmem:[#allocation2 + $0xe] sm:$0x1] %vm95_vm0, %v151_v17  ;;  %v250_v37 = vld [vmem:[%s3128_s21 + $0x18] sm:$0xff]  ;;  %v249_v39 = vld [vmem:[%s3128_s21 + $0x10] sm:$0xff] }
  0x38   :  { %v155_v19 = vld [vmem:[%s154_s24] sm:$0x1]  ;;  %v160_v20 = vadd.f32 %v158_v18, %v157_v12  ;;  %273 = vmatpush.msra.mxu0 %v250_v37  ;;  %v248_v41 = vld [vmem:[%s3128_s21 + $0x8] sm:$0xff] }
  0x39   :  { %156 = vst.msk [vmem:[#allocation2 + $0xf] sm:$0x1] %vm95_vm0, %v155_v19  ;;  %v247_v43 = vld [vmem:[%s3128_s21] sm:$0xff]  ;;  %vm1003_vm0 = vcmask 523264  }
  0x3a   :  { %v2499_v21 = vadd.f32 %v2163_v14, %v160_v20  ;;  %274 = vmatpush.msra.mxu0 %v249_v39  ;;  %v2533_v52 = vld [vmem:[%s3129_s25] sm:$0xf] }
  0x3b   :  { %v244_v54 = vrot.slane %v2533_v52, 1  ;;  %v2537_v55 = vperm.slane %v2533_v52, 0  ;;  %v2164_v5 = vld [vmem:[%s3130_s22] ss:$0 sm:$0xff]  ;;  %v246_v31 = vrot.slane %v2533_v52, 3 }
  0x3c   :  { %v171_v22 = vsel %vm170_vm1, %v2499_v21, 0.0  ;;  %v186_v23 = vmul.f32 %v2499_v21, %v2499_v21  ;;  %275 = vmatpush.msra.mxu0 %v248_v41  ;;  %v2165_v9 = vld [vmem:[%s3131_s8] ss:$0 sm:$0xff]  ;;  %s3136_s8 = sld [smem:[#allocation19_spill]] }
  0x3d   :  { %172 = vadd.xlane.f32.xlu0 %v171_v22  ;;  %v2540_v57 = vperm.slane %v244_v54, 0  ;;  %v2166_v20 = vld [vmem:[%s3091_s9] ss:$0 sm:$0xff]  ;;  %v2591_v33 = vperm.slane %v246_v31, 0 }
  0x3e   :  { %v188_v27 = vsel %vm170_vm1, %v186_v23, 0.0  ;;  %276 = vmatpush.msra.mxu0 %v247_v43  ;;  %v236_v39 = vld [vmem:[%s3132_s5] sm:$0x3] }
  0x3f   :  { %v237_v41 = vcvt.s32.f32 %v236_v39 }
  0x40   :  { %v159_v24 = vld [vmem:[#allocation2 + $0x8] sm:$0xff] }
  0x41   :  { %v161_v25 = vadd.f32 %v159_v24, %v157_v12 }
  0x43   :  { %v2505_v26 = vadd.f32 %v2163_v14, %v161_v25  ;;  %v245_v25 = vrot.slane %v2533_v52, 2 }
  0x45   :  { %v174_v28 = vsel %vm170_vm1, %v2505_v26, 0.0  ;;  %189 = vadd.xlane.f32.xlu0 %v188_v27  ;;  %v187_v29 = vmul.f32 %v2505_v26, %v2505_v26 }
  0x46   :  { %175 = vadd.xlane.f32.xlu1 %v174_v28 }
  0x47   :  { %v191_v30 = vsel %vm170_vm1, %v187_v29, 0.0 }
  0x4e   :  { %192 = vadd.xlane.f32.xlu1 %v191_v30 }
  0x59   :  { %300 = vrot.lane.b32.xlu0 %v2537_v55, %s2296_s29 }
  0x67   :  { %302 = vrot.lane.b32.xlu1 %v2540_v57, %s2296_s29 }
  0xb0   :  { %v173_v38 = vpop.xlane.xlu0 %172 }
  0xb1   :  { %v184_v42 = vmul.f32 %v2519_v40, %v173_v38 }
  0xb3   :  { %v196_v46 = vmul.f32 %v184_v42, %v184_v42  ;;  %v200_v4 = vsub.f32 %v2499_v21, %v184_v42  ;;  %v2034_v42 = vadd.f32 -1.0, %v237_v41 }
  0xb5   :  { %v239_v43 = vmul.f32 1e+09, %v2034_v42 }
  0xb8   :  { %v190_v45 = vpop.xlane.xlu0 %189 }
  0xb9   :  { %v176_v44 = vpop.xlane.xlu1 %175  ;;  %v194_v47 = vmul.f32 %v190_v45, %v2519_v40 }
  0xba   :  { %v185_v48 = vmul.f32 %v2519_v40, %v176_v44  ;;  %v2614_v44 = vperm.slane %v239_v43, 0 }
  0xbb   :  { %v198_v49 = vsub.f32 %v194_v47, %v196_v46 }
  0xbc   :  { %v197_v51 = vmul.f32 %v185_v48, %v185_v48  ;;  %v201_v13 = vsub.f32 %v2505_v26, %v185_v48  ;;  %v2574_v26 = vperm.slane %v245_v25, 0  ;;  %v241_v48 = vrot.slane %v239_v43, 1 }
  0xbd   :  { %v202_v50 = vadd.f32 1e-05, %v198_v49 }
  0xbf   :  { %2186 = vrsqrt.f32 %v202_v50  ;;  %vm210_vm4 = vweird.f32 %v202_v50 }
  0xc1   :  { %v193_v53 = vpop.xlane.xlu1 %192 }
  0xc2   :  { %v195_v56 = vmul.f32 %v193_v53, %v2519_v40  ;;  %v2623_v53 = vperm.slane %v241_v48, 0 }
  0xc4   :  { %v199_v58 = vsub.f32 %v195_v56, %v197_v51 }
  0xc5   :  { %v2187_v59 = vpop.eup %2186 }
  0xc6   :  { %v203_v60 = vadd.f32 1e-05, %v199_v58  ;;  %v205_v61 = vmul.f32 %v2187_v59, %v202_v50  ;;  %vm211_vm3 = vweird.f32 %v2187_v59 }
  0xc7   :  { %vm212_vm5 = vmor %vm210_vm4, %vm211_vm3 }
  0xc8   :  { %2188 = vrsqrt.f32 %v203_v60  ;;  %v206_v62 = vmul.f32 %v2187_v59, %v205_v61  ;;  %vm220_vm6 = vweird.f32 %v203_v60 }
  0xca   :  { %v207_v63 = vmul.f32 0.5, %v206_v62 }
  0xcc   :  { %v208_v0 = vsub.f32 1.5, %v207_v63 }
  0xce   :  { %v2189_v1 = vpop.eup %2188  ;;  %v209_v2 = vmul.f32 %v2187_v59, %v208_v0  ;;  %v2632_v0 = vpop.permute.xlu0 %300 }
  0xcf   :  { %v215_v3 = vmul.f32 %v2189_v1, %v203_v60  ;;  %vm221_vm7 = vweird.f32 %v2189_v1 }
  0xd0   :  { %v213_v7 = vsel %vm212_vm5, %v2187_v59, %v209_v2  ;;  %vm222_vm8 = vmor %vm220_vm6, %vm221_vm7 }
  0xd1   :  { %v216_v6 = vmul.f32 %v2189_v1, %v215_v3  ;;  %v224_v8 = vmul.f32 %v213_v7, %v200_v4 }
  0xd3   :  { %v217_v10 = vmul.f32 0.5, %v216_v6  ;;  %v229_v11 = vmul.f32 %v2164_v5, %v224_v8 }
  0xd5   :  { %v218_v12 = vsub.f32 1.5, %v217_v10  ;;  %v2554_v14 = vadd.f32 %v2165_v9, %v229_v11 }
  0xd7   :  { %v219_v15 = vmul.f32 %v2189_v1, %v218_v12  ;;  %2035 = vmatmul.msk.f32.vlgmr.msra.gmra.mxu0 %vm170_vm1, %v2554_v14 }
  0xd9   :  { %v223_v16 = vsel %vm222_vm8, %v2189_v1, %v219_v15  ;;  %v2630_v63 = vpop.permute.xlu1 %302 }
  0xda   :  { %v225_v17 = vmul.f32 %v223_v16, %v201_v13 }
  0xdc   :  { %v230_v18 = vmul.f32 %v2164_v5, %v225_v17 }
  0xde   :  { %v2558_v19 = vadd.f32 %v2165_v9, %v230_v18 }
  0xe0   :  { %2036 = vmatmul.msk.f32.gmra.mxu0 %vm170_vm1, %v2558_v19 }
 0x154   :  { %v278_v21 = vpop.f32.mrf.mxu0 }
 0x155   :  { %v2565_v22 = vadd.f32 %v2166_v20, %v278_v21 }
 0x157   :  { %325 = vrot.lane.b32.xlu2 %v2565_v22, %s2297_s28  ;;  %v292_v28 = vmul.f32 %v2537_v55, %v2565_v22  ;;  %v294_v29 = vmul.f32 %v2540_v57, %v2565_v22  ;;  %v296_v30 = vmul.f32 %v2574_v26, %v2565_v22  ;;  %v298_v38 = vmul.f32 %v2591_v33, %v2565_v22 }
 0x158   :  { %v314_v2 = vmul.f32 %v2630_v63, %v2565_v22  ;;  %v312_v3 = vmul.f32 %v2632_v0, %v2565_v22 }
 0x15a   :  { %v2133_v6 = vpack.i.bf16 %v314_v2, %v312_v3 }
 0x15d   :  { %v281_v23 = vpop.f32.mrf.mxu0 }
 0x15e   :  { %v2569_v24 = vadd.f32 %v2166_v20, %v281_v23 }
 0x160   :  { %353 = vrot.lane.b32.xlu2 %v2569_v24, %s2297_s28  ;;  %v293_v34 = vmul.f32 %v2537_v55, %v2569_v24  ;;  %v295_v35 = vmul.f32 %v2540_v57, %v2569_v24  ;;  %v297_v36 = vmul.f32 %v2574_v26, %v2569_v24  ;;  %v299_v37 = vmul.f32 %v2591_v33, %v2569_v24 }
 0x1b1   :  { %v326_v27 = vpop.permute.xlu2 %325 }
 0x1b2   :  { %2037 = vmatpush.xpose.msk.msra.mxu1 %vm170_vm1, %v326_v27  ;;  %2041 = vmatpush.xpose.msk.msra.mxu3 %vm170_vm1, %v326_v27 }
 0x1b3   :  { %2045 = vmatpush.xpose.msk.msra.mxu2 %vm170_vm1, %v326_v27 }
 0x1b5   :  { %2038 = vmatmul.msk.f32.vlgmr.msra.gmra.mxu1 %vm170_vm1, %v292_v28  ;;  %2042 = vmatmul.msk.f32.vlgmr.msra.gmra.mxu3 %vm170_vm1, %v294_v29 }
 0x1b6   :  { %2046 = vmatmul.msk.f32.vlgmr.msra.gmra.mxu2 %vm170_vm1, %v296_v30  ;;  %v315_v30 = vmul.f32 %v2630_v63, %v2569_v24 }
 0x1ba   :  { %v354_v32 = vpop.permute.xlu2 %353 }
 0x1bb   :  { %2039 = vmatpush.xpose.msk.msrb.mxu0 %vm170_vm1, %v354_v32  ;;  %2043 = vmatpush.xpose.msk.msrb.mxu1 %vm170_vm1, %v354_v32 }
 0x1bc   :  { %2047 = vmatpush.xpose.msk.msrb.mxu3 %vm170_vm1, %v354_v32  ;;  %2051 = vmatpush.xpose.msk.msrb.mxu2 %vm170_vm1, %v354_v32 }
 0x1be   :  { %2040 = vmatmul.msk.f32.vlgmr.msrb.gmra.mxu0 %vm170_vm1, %v293_v34  ;;  %2044 = vmatmul.msk.f32.vlgmr.msrb.gmra.mxu1 %vm170_vm1, %v295_v35 }
 0x1bf   :  { %2049 = vmatpush.xpose.msk.msra.mxu1 %vm170_vm1, %v326_v27  ;;  %2048 = vmatmul.msk.f32.vlgmr.msrb.gmra.mxu3 %vm170_vm1, %v297_v36 }
 0x1c0   :  { %2052 = vmatmul.msk.f32.vlgmr.msrb.gmra.mxu2 %vm170_vm1, %v299_v37 }
 0x1c6   :  { %2050 = vmatmul.msk.f32.vlgmr.msra.gmra.mxu1 %vm170_vm1, %v298_v38 }
 0x232   :  { %v349_v45 = vpop.f32.mrf.mxu1 }
 0x233   :  { %v2617_v46 = vadd.f32 %v349_v45, %v2614_v44 }
 0x235   :  { %v519_v47 = vsel %vm518_vm9, %v2617_v46, -inf }
 0x236   :  { %520 = vmax.xlane.f32.xlu0 %v519_v47 }
 0x238   :  { %v400_v49 = vpop.f32.mrf.mxu3 }
 0x239   :  { %v401_v50 = vadd.f32 %v400_v49, %v2614_v44  ;;  %v446_v51 = vpop.f32.mrf.mxu2 }
 0x23a   :  { %v447_v52 = vadd.f32 %v446_v51, %v2614_v44 }
 0x23b   :  { %v525_v54 = vsel %vm518_vm9, %v401_v50, -inf  ;;  %v377_v56 = vpop.f32.mrf.mxu0  ;;  %v423_v8 = vpop.f32.mrf.mxu1 }
 0x23c   :  { %v531_v58 = vsel %vm518_vm9, %v447_v52, -inf  ;;  %526 = vmax.xlane.f32.xlu1 %v525_v54  ;;  %v378_v59 = vadd.f32 %v377_v56, %v2623_v53  ;;  %v424_v9 = vadd.f32 %v423_v8, %v2623_v53 }
 0x23d   :  { %532 = vmax.xlane.f32.xlu2 %v531_v58 }
 0x23e   :  { %v522_v60 = vsel %vm518_vm9, %v378_v59, -inf  ;;  %v528_v10 = vsel %vm518_vm9, %v424_v9, -inf }
 0x242   :  { %v469_v4 = vpop.f32.mrf.mxu3 }
 0x243   :  { %v515_v61 = vpop.f32.mrf.mxu2  ;;  %v2642_v5 = vadd.f32 %v469_v4, %v2623_v53  ;;  %v492_v11 = vpop.f32.mrf.mxu1 }
 0x244   :  { %523 = vmax.xlane.f32.xlu1 %v522_v60  ;;  %v516_v62 = vadd.f32 %v515_v61, %v2623_v53  ;;  %v2652_v12 = vadd.f32 %v492_v11, %v2614_v44 }
 0x245   :  { %v534_v7 = vsel %vm518_vm9, %v2642_v5, -inf }
 0x246   :  { %v540_v1 = vsel %vm518_vm9, %v516_v62, -inf  ;;  %v537_v13 = vsel %vm518_vm9, %v2652_v12, -inf }
 0x24a   :  { %306 = vrot.lane.b32.xlu0 %v2591_v33, %s2296_s29 }
 0x24c   :  { %541 = vmax.xlane.f32.xlu1 %v540_v1 }
 0x252   :  { %2134 = vrot.lane.b32.xlu0 %v2133_v6, %s2296_s29  ;;  %v313_v6 = vmul.f32 %v2632_v0, %v2569_v24 }
 0x254   :  { %535 = vmax.xlane.f32.xlu1 %v534_v7 }
 0x255   :  { %304 = vrot.lane.b32.xlu2 %v2574_v26, %s2296_s29 }
 0x27c   :  { %529 = vmax.xlane.f32.xlu0 %v528_v10 }
 0x284   :  { %538 = vmax.xlane.f32.xlu0 %v537_v13 }
 0x2a9   :  { %v521_v23 = vpop.xlane.xlu0 %520 }
 0x2af   :  { %v527_v15 = vpop.xlane.xlu1 %526 }
 0x2b0   :  { %v533_v16 = vpop.xlane.xlu2 %532  ;;  %v545_v17 = vsub.f32 %v401_v50, %v527_v15 }
 0x2b1   :  { %v547_v18 = vsub.f32 %v447_v52, %v533_v16  ;;  %v543_v52 = vsub.f32 %v2617_v46, %v521_v23 }
 0x2b2   :  { %v555_v20 = vmul.f32 1.442695, %v545_v17 }
 0x2b3   :  { %v559_v21 = vmul.f32 1.442695, %v547_v18  ;;  %v551_v54 = vmul.f32 1.442695, %v543_v52 }
 0x2b4   :  { %2190 = vpow2.f32 %v555_v20 }
 0x2b5   :  { %2192 = vpow2.f32 %v559_v21 }
 0x2b7   :  { %v524_v25 = vpop.xlane.xlu1 %523 }
 0x2b8   :  { %v2656_v27 = vpop.permute.xlu2 %304  ;;  %v544_v28 = vsub.f32 %v378_v59, %v524_v25 }
 0x2b9   :  { %v316_v29 = vmul.f32 %v2656_v27, %v2565_v22  ;;  %v317_v16 = vmul.f32 %v2656_v27, %v2569_v24 }
 0x2ba   :  { %v2662_v31 = vpop.eup %2190  ;;  %v553_v32 = vmul.f32 1.442695, %v544_v28 }
 0x2bb   :  { %v2664_v34 = vpop.eup %2192  ;;  %v573_v35 = vsel %vm518_vm9, %v2662_v31, 0.0  ;;  %v2138_v36 = vpack.i.bf16 %v315_v30, %v316_v29 }
 0x2bc   :  { %2194 = vpow2.f32 %v553_v32  ;;  %v579_v37 = vsel %vm518_vm9, %v2664_v34, 0.0  ;;  %574 = vadd.xlane.f32.xlu1 %v573_v35  ;;  %v2670_v38 = vpop.permute.xlu0 %306 }
 0x2bd   :  { %580 = vadd.xlane.f32.xlu2 %v579_v37  ;;  %2139 = vrot.lane.b32.xlu0 %v2138_v36, %s2296_s29  ;;  %v319_v58 = vmul.f32 %v2670_v38, %v2569_v24  ;;  %v318_v46 = vmul.f32 %v2670_v38, %v2565_v22 }
 0x2bf   :  { %v542_v39 = vpop.xlane.xlu1 %541  ;;  %v2143_v7 = vpack.i.bf16 %v318_v46, %v313_v6 }
 0x2c0   :  { %v550_v41 = vsub.f32 %v516_v62, %v542_v39 }
 0x2c2   :  { %v2673_v42 = vpop.eup %2194  ;;  %v565_v43 = vmul.f32 1.442695, %v550_v41 }
 0x2c3   :  { %v570_v45 = vsel %vm518_vm9, %v2673_v42, 0.0 }
 0x2c4   :  { %2196 = vpow2.f32 %v565_v43  ;;  %v2135_v47 = vpop.permute.xlu0 %2134 }
 0x2c5   :  { %571 = vadd.xlane.f32.xlu2 %v570_v45  ;;  %v2137_v48 = vunpack.i.h.bf16 %v2135_v47  ;;  %v2136_v49 = vunpack.i.l.bf16 %v2135_v47  ;;  %2198 = vpow2.f32 %v551_v54 }
 0x2c7   :  { %629 = vmatpush.msra.mxu3 %v2136_v49  ;;  %683 = vmatpush.msrb.mxu1 %v2137_v48  ;;  %v536_v60 = vpop.xlane.xlu1 %535 }
 0x2c8   :  { %v548_v1 = vsub.f32 %v2642_v5, %v536_v60 }
 0x2ca   :  { %v2677_v50 = vpop.eup %2196  ;;  %v561_v3 = vmul.f32 1.442695, %v548_v1  ;;  %v837_v1 = vld [vmem:[%s3092_s10] sm:$0xff] }
 0x2cb   :  { %v588_v51 = vsel %vm518_vm9, %v2677_v50, 0.0  ;;  %v2199_v56 = vpop.eup %2198 }
 0x2cc   :  { %v567_v59 = vsel %vm518_vm9, %v2199_v56, 0.0 }
 0x2cd   :  { %589 = vadd.xlane.f32.xlu2 %v588_v51 }
 0x2e5   :  { %797 = vrot.lane.b32.xlu2 %v319_v58, %s2296_s29 }
 0x2e7   :  { %568 = vadd.xlane.f32.xlu0 %v567_v59 }
 0x2ef   :  { %v530_v61 = vpop.xlane.xlu0 %529 }
 0x2f0   :  { %v546_v62 = vsub.f32 %v424_v9, %v530_v61  ;;  %v840_v61 = vld [vmem:[%s3092_s10 + $0x18] sm:$0xff] }
 0x2f2   :  { %v557_v2 = vmul.f32 1.442695, %v546_v62  ;;  %v838_v62 = vld [vmem:[%s3092_s10 + $0x8] sm:$0xff] }
 0x2f4   :  { %2200 = vpow2.f32 %v557_v2 }
 0x2f5   :  { %2202 = vpow2.f32 %v561_v3 }
 0x2f7   :  { %v539_v4 = vpop.xlane.xlu0 %538 }
 0x2f8   :  { %v549_v10 = vsub.f32 %v2652_v12, %v539_v4 }
 0x2fa   :  { %v2201_v8 = vpop.eup %2200  ;;  %v563_v5 = vmul.f32 1.442695, %v549_v10 }
 0x2fb   :  { %2144 = vrot.lane.b32.xlu0 %v2143_v7, %s2296_s29  ;;  %v576_v9 = vsel %vm518_vm9, %v2201_v8, 0.0  ;;  %v2203_v11 = vpop.eup %2202 }
 0x2fc   :  { %577 = vadd.xlane.f32.xlu1 %v576_v9  ;;  %2204 = vpow2.f32 %v563_v5  ;;  %v582_v22 = vsel %vm518_vm9, %v2203_v11, 0.0 }
 0x302   :  { %v2205_v13 = vpop.eup %2204 }
 0x303   :  { %v585_v15 = vsel %vm518_vm9, %v2205_v13, 0.0 }
 0x304   :  { %583 = vadd.xlane.f32.xlu1 %v582_v22 }
 0x30c   :  { %586 = vadd.xlane.f32.xlu1 %v585_v15 }
 0x325   :  { %743 = vrot.lane.b32.xlu1 %v317_v16, %s2296_s29 }
 0x32f   :  { %v2140_v12 = vpop.permute.xlu0 %2139  ;;  %v575_v17 = vpop.xlane.xlu1 %574 }
 0x330   :  { %v2142_v18 = vunpack.i.h.bf16 %v2140_v12  ;;  %v2141_v20 = vunpack.i.l.bf16 %v2140_v12  ;;  %v581_v21 = vpop.xlane.xlu2 %580  ;;  %2206 = vrcp.f32 %v575_v17 }
 0x332   :  { %710 = vmatpush.msra.mxu2 %v2142_v18  ;;  %737 = vmatpush.msrb.mxu3 %v2141_v20 }
 0x336   :  { %v2207_v23 = vpop.eup %2206 }
 0x337   :  { %v601_v25 = vmul.f32 %v2207_v23, %v2662_v31 }
 0x338   :  { %v572_v28 = vpop.xlane.xlu2 %571 }
 0x339   :  { %2055 = vmatmul.msk.f32.vlgmr.msrb.gmra.mxu1 %vm518_vm9, %v601_v25 }
 0x340   :  { %v590_v29 = vpop.xlane.xlu2 %589 }
 0x348   :  { %v798_v30 = vpop.permute.xlu2 %797 }
 0x349   :  { %818 = vmatpush.msrb.mxu2 %v798_v30 }
 0x35a   :  { %v569_v24 = vpop.xlane.xlu0 %568 }
 0x35b   :  { %2208 = vrcp.f32 %v569_v24 }
 0x35c   :  { %2210 = vrcp.f32 %v581_v21 }
 0x35d   :  { %2212 = vrcp.f32 %v572_v28  ;;  %v2167_v28 = vld [vmem:[%s3093_s11] ss:$0 sm:$0xff] }
 0x361   :  { %v2209_v32 = vpop.eup %2208 }
 0x362   :  { %v599_v35 = vmul.f32 %v2209_v32, %v2199_v56  ;;  %v2211_v36 = vpop.eup %2210 }
 0x363   :  { %v603_v37 = vmul.f32 %v2211_v36, %v2664_v34  ;;  %v2213_v39 = vpop.eup %2212 }
 0x364   :  { %2053 = vmatmul.msk.f32.vlgmr.msra.gmra.mxu3 %vm518_vm9, %v599_v35  ;;  %v600_v45 = vmul.f32 %v2213_v39, %v2673_v42 }
 0x365   :  { %863 = vmatpush.msra.mxu3 %v840_v61 }
 0x36c   :  { %2057 = vmatmul.msk.f32.vlgmr.msrb.gmra.mxu3 %vm518_vm9, %v603_v37 }
 0x36d   :  { %v2145_v31 = vpop.permute.xlu0 %2144 }
 0x36e   :  { %v2147_v41 = vunpack.i.h.bf16 %v2145_v31  ;;  %v2146_v43 = vunpack.i.l.bf16 %v2145_v31 }
 0x36f   :  { %v578_v47 = vpop.xlane.xlu1 %577 }
 0x370   :  { %2214 = vrcp.f32 %v578_v47  ;;  %656 = vmatpush.msra.mxu0 %v2146_v43  ;;  %791 = vmatpush.msra.mxu1 %v2147_v41  ;;  %v938_v47 = vld [vmem:[%s3096_s14 + $0x10] sm:$0xff] }
 0x371   :  { %2054 = vmatmul.msk.f32.vlgmr.msra.gmra.mxu0 %vm518_vm9, %v600_v45  ;;  %2216 = vrcp.f32 %v590_v29 }
 0x376   :  { %v2215_v48 = vpop.eup %2214 }
 0x377   :  { %v602_v49 = vmul.f32 %v2215_v48, %v2201_v8  ;;  %v584_v51 = vpop.xlane.xlu1 %583  ;;  %v2217_v34 = vpop.eup %2216 }
 0x378   :  { %v606_v52 = vmul.f32 %v2217_v34, %v2677_v50  ;;  %v839_v50 = vld [vmem:[%s3092_s10 + $0x10] sm:$0xff] }
 0x379   :  { %2056 = vmatmul.msk.f32.vlgmr.msra.gmra.mxu2 %vm518_vm9, %v602_v49  ;;  %864 = vmatpush.msra.mxu3 %v839_v50  ;;  %v936_v49 = vld [vmem:[%s3096_s14] sm:$0xff] }
 0x37b   :  { %865 = vmatpush.msra.mxu3 %v838_v62 }
 0x37d   :  { %866 = vmatpush.msra.mxu3 %v837_v1 }
 0x37f   :  { %v587_v54 = vpop.xlane.xlu1 %586 }
 0x380   :  { %2218 = vrcp.f32 %v587_v54 }
 0x381   :  { %2060 = vmatmul.msk.f32.vlgmr.msrb.gmra.mxu2 %vm518_vm9, %v606_v52  ;;  %2220 = vrcp.f32 %v584_v51 }
 0x386   :  { %v2219_v42 = vpop.eup %2218 }
 0x387   :  { %v605_v56 = vmul.f32 %v2219_v42, %v2205_v13  ;;  %v2221_v58 = vpop.eup %2220 }
 0x388   :  { %v604_v59 = vmul.f32 %v2221_v58, %v2203_v11 }
 0x389   :  { %2059 = vmatmul.msk.f32.vlgmr.msra.gmra.mxu1 %vm518_vm9, %v605_v56 }
 0x397   :  { %v744_v60 = vpop.permute.xlu1 %743 }
 0x398   :  { %764 = vmatpush.msrb.mxu0 %v744_v60 }
 0x399   :  { %2058 = vmatmul.msk.f32.vlgmr.msrb.gmra.mxu0 %vm518_vm9, %v604_v59 }
 0x3b6   :  { %v685_v46 = vpop.f32.mrf.mxu1 }
 0x3b7   :  { %v824_v6 = vsel %vm170_vm1, %v685_v46, 0.0 }
 0x3e7   :  { %v631_v2 = vpop.f32.mrf.mxu3 }
 0x3e8   :  { %v823_v4 = vsel %vm170_vm1, %v631_v2, 0.0 }
 0x3e9   :  { %v825_v8 = vadd.f32 %v824_v6, %v823_v4 }
 0x3ee   :  { %v658_v13 = vpop.f32.mrf.mxu0 }
 0x3ef   :  { %v739_v3 = vpop.f32.mrf.mxu3  ;;  %v830_v16 = vsel %vm170_vm1, %v658_v13, 0.0 }
 0x3f0   :  { %v826_v7 = vsel %vm170_vm1, %v739_v3, 0.0 }
 0x3f1   :  { %v827_v10 = vadd.f32 %v826_v7, %v825_v8  ;;  %v2168_v8 = vld [vmem:[%s3094_s12] ss:$0 sm:$0xff] }
 0x3fc   :  { %v712_v22 = vpop.f32.mrf.mxu2 }
 0x3fd   :  { %v831_v15 = vsel %vm170_vm1, %v712_v22, 0.0 }
 0x3fe   :  { %v832_v12 = vadd.f32 %v831_v15, %v830_v16 }
 0x404   :  { %v820_v17 = vpop.f32.mrf.mxu2 }
 0x405   :  { %v835_v23 = vsel %vm170_vm1, %v820_v17, 0.0 }
 0x406   :  { %v793_v9 = vpop.f32.mrf.mxu1 }
 0x407   :  { %v828_v5 = vsel %vm170_vm1, %v793_v9, 0.0 }
 0x408   :  { %v829_v11 = vadd.f32 %v828_v5, %v827_v10 }
 0x40a   :  { %2061 = vmatmul.msk.f32.vlgmr.msra.gmra.mxu3 %vm170_vm1, %v829_v11  ;;  %v2169_v11 = vld [vmem:[%s3095_s13] ss:$0 sm:$0xff] }
 0x416   :  { %v766_v18 = vpop.f32.mrf.mxu0 }
 0x417   :  { %v833_v20 = vsel %vm170_vm1, %v766_v18, 0.0 }
 0x418   :  { %v834_v21 = vadd.f32 %v833_v20, %v832_v12 }
 0x41a   :  { %v836_v25 = vadd.f32 %v835_v23, %v834_v21 }
 0x41c   :  { %2062 = vmatmul.msk.f32.gmra.mxu3 %vm170_vm1, %v836_v25 }
 0x48d   :  { %v868_v29 = vpop.f32.mrf.mxu3 }
 0x48e   :  { %v869_v30 = vadd.f32 %v2167_v28, %v868_v29 }
 0x490   :  { %v874_v24 = vadd.f32 %v869_v30, %v2554_v14  ;;  %v939_v14 = vld [vmem:[%s3096_s14 + $0x18] sm:$0xff] }
 0x491   :  { %962 = vmatpush.msra.mxu0 %v939_v14  ;;  %v998_v30 = vld [vmem:[%s3098_s16 + $0x38] sm:$0xff] }
 0x492   :  { %v878_v32 = vsel %vm170_vm1, %v874_v24, 0.0  ;;  %v886_v35 = vmul.f32 %v874_v24, %v874_v24  ;;  %1018 = vmatpush.msrb.mxu1 %v998_v30 }
 0x493   :  { %879 = vadd.xlane.f32.xlu0 %v878_v32  ;;  %963 = vmatpush.msra.mxu0 %v938_v47  ;;  %v996_v32 = vld [vmem:[%s3098_s16 + $0x28] sm:$0xff] }
 0x494   :  { %v888_v36 = vsel %vm170_vm1, %v886_v35, 0.0  ;;  %v995_v35 = vld [vmem:[%s3098_s16 + $0x20] sm:$0xff] }
 0x495   :  { %889 = vadd.xlane.f32.xlu2 %v888_v36  ;;  %v994_v36 = vld [vmem:[%s3098_s16 + $0x18] sm:$0xff] }
 0x49f   :  { %v871_v37 = vpop.f32.mrf.mxu3 }
 0x4a0   :  { %v872_v39 = vadd.f32 %v2167_v28, %v871_v37  ;;  %v993_v37 = vld [vmem:[%s3098_s16 + $0x10] sm:$0xff] }
 0x4a2   :  { %v875_v31 = vadd.f32 %v872_v39, %v2558_v19  ;;  %v937_v19 = vld [vmem:[%s3096_s14 + $0x8] sm:$0xff] }
 0x4a3   :  { %964 = vmatpush.msra.mxu0 %v937_v19  ;;  %v992_v39 = vld [vmem:[%s3098_s16 + $0x8] sm:$0xff] }
 0x4a4   :  { %v881_v41 = vsel %vm170_vm1, %v875_v31, 0.0  ;;  %v887_v43 = vmul.f32 %v875_v31, %v875_v31 }
 0x4a5   :  { %882 = vadd.xlane.f32.xlu1 %v881_v41  ;;  %965 = vmatpush.msra.mxu0 %v936_v49  ;;  %v2170_v41 = vld [vmem:[%s3097_s15] ss:$0 sm:$0xff] }
 0x4a6   :  { %v891_v45 = vsel %vm170_vm1, %v887_v43, 0.0 }
 0x4a7   :  { %892 = vadd.xlane.f32.xlu0 %v891_v45 }
 0x506   :  { %v880_v48 = vpop.xlane.xlu0 %879 }
 0x507   :  { %v884_v51 = vmul.f32 %v880_v48, %v2519_v40 }
 0x508   :  { %v890_v34 = vpop.xlane.xlu2 %889 }
 0x509   :  { %v896_v52 = vmul.f32 %v884_v51, %v884_v51  ;;  %v894_v54 = vmul.f32 %v890_v34, %v2519_v40  ;;  %v900_v7 = vsub.f32 %v874_v24, %v884_v51  ;;  %v997_v24 = vld [vmem:[%s3098_s16 + $0x30] sm:$0xff] }
 0x50a   :  { %1019 = vmatpush.msrb.mxu1 %v997_v24 }
 0x50b   :  { %v898_v42 = vsub.f32 %v894_v54, %v896_v52 }
 0x50c   :  { %1020 = vmatpush.msrb.mxu1 %v996_v32 }
 0x50d   :  { %v902_v56 = vadd.f32 1e-05, %v898_v42 }
 0x50e   :  { %1021 = vmatpush.msrb.mxu1 %v995_v35 }
 0x50f   :  { %2222 = vrsqrt.f32 %v902_v56  ;;  %vm910_vm11 = vweird.f32 %v902_v56 }
 0x510   :  { %1022 = vmatpush.msrb.mxu1 %v994_v36 }
 0x512   :  { %1023 = vmatpush.msrb.mxu1 %v993_v37 }
 0x514   :  { %1024 = vmatpush.msrb.mxu1 %v992_v39 }
 0x515   :  { %v2223_v58 = vpop.eup %2222 }
 0x516   :  { %v905_v59 = vmul.f32 %v2223_v58, %v902_v56  ;;  %vm911_vm10 = vweird.f32 %v2223_v58 }
 0x517   :  { %vm912_vm12 = vmor %vm910_vm11, %vm911_vm10 }
 0x518   :  { %v906_v60 = vmul.f32 %v2223_v58, %v905_v59  ;;  %v883_v61 = vpop.xlane.xlu1 %882 }
 0x519   :  { %v885_v50 = vmul.f32 %v883_v61, %v2519_v40 }
 0x51a   :  { %v907_v62 = vmul.f32 0.5, %v906_v60  ;;  %v893_v1 = vpop.xlane.xlu0 %892 }
 0x51b   :  { %v897_v2 = vmul.f32 %v885_v50, %v885_v50  ;;  %v895_v46 = vmul.f32 %v893_v1, %v2519_v40  ;;  %v901_v21 = vsub.f32 %v875_v31, %v885_v50  ;;  %v991_v31 = vld [vmem:[%s3098_s16] sm:$0xff] }
 0x51c   :  { %v908_v3 = vsub.f32 1.5, %v907_v62  ;;  %1025 = vmatpush.msrb.mxu1 %v991_v31 }
 0x51d   :  { %v899_v4 = vsub.f32 %v895_v46, %v897_v2 }
 0x51e   :  { %v909_v6 = vmul.f32 %v2223_v58, %v908_v3  ;;  %v2171_v3 = vld [vmem:[%s3099_s17] ss:$0 sm:$0xff] }
 0x51f   :  { %v903_v10 = vadd.f32 1e-05, %v899_v4 }
 0x520   :  { %v913_v9 = vsel %vm912_vm12, %v2223_v58, %v909_v6 }
 0x521   :  { %v924_v5 = vmul.f32 %v913_v9, %v900_v7  ;;  %2224 = vrsqrt.f32 %v903_v10  ;;  %vm920_vm14 = vweird.f32 %v903_v10 }
 0x523   :  { %v929_v22 = vmul.f32 %v2168_v8, %v924_v5 }
 0x525   :  { %v2764_v13 = vadd.f32 %v2169_v11, %v929_v22 }
 0x527   :  { %v2225_v15 = vpop.eup %2224  ;;  %2063 = vmatmul.msk.f32.vlgmr.msra.gmra.mxu0 %vm170_vm1, %v2764_v13 }
 0x528   :  { %v915_v16 = vmul.f32 %v2225_v15, %v903_v10  ;;  %vm921_vm13 = vweird.f32 %v2225_v15 }
 0x529   :  { %vm922_vm15 = vmor %vm920_vm14, %vm921_vm13 }
 0x52a   :  { %v916_v12 = vmul.f32 %v2225_v15, %v915_v16 }
 0x52c   :  { %v917_v17 = vmul.f32 0.5, %v916_v12 }
 0x52e   :  { %v918_v18 = vsub.f32 1.5, %v917_v17  ;;  %v2069_v17 = vld [vmem:[%s3128_s21 + $0x30] sm:$0xff] }
 0x530   :  { %v919_v20 = vmul.f32 %v2225_v15, %v918_v18  ;;  %v2068_v18 = vld [vmem:[%s3128_s21 + $0x28] sm:$0xff] }
 0x532   :  { %v923_v23 = vsel %vm922_vm15, %v2225_v15, %v919_v20 }
 0x533   :  { %v925_v25 = vmul.f32 %v923_v23, %v901_v21  ;;  %v2067_v21 = vld [vmem:[%s3128_s21 + $0x20] sm:$0xff] }
 0x535   :  { %v930_v28 = vmul.f32 %v2168_v8, %v925_v25 }
 0x537   :  { %v935_v29 = vadd.f32 %v2169_v11, %v930_v28 }
 0x539   :  { %2064 = vmatmul.msk.f32.gmra.mxu0 %vm170_vm1, %v935_v29 }
 0x5a4   :  { %v967_v43 = vpop.f32.mrf.mxu0 }
 0x5a5   :  { %v968_v45 = vadd.f32 %v2170_v41, %v967_v43 }
 0x5a7   :  { %v975_v14 = vmul.f32 0.044715, %v968_v45  ;;  %v973_v54 = vmul.f32 0.5, %v968_v45 }
 0x5a9   :  { %v977_v47 = vmul.f32 %v975_v14, %v968_v45 }
 0x5ab   :  { %v979_v19 = vmul.f32 %v977_v47, %v968_v45 }
 0x5ad   :  { %v981_v48 = vadd.f32 %v979_v19, %v968_v45 }
 0x5af   :  { %v983_v49 = vmul.f32 0.7978846, %v981_v48 }
 0x5b1   :  { %2226 = vtanh.f32 %v983_v49  ;;  %v2172_v49 = vld [vmem:[%s3100_s18] ss:$0 sm:$0xff] }
 0x5b6   :  { %v970_v51 = vpop.f32.mrf.mxu0 }
 0x5b7   :  { %v2227_v34 = vpop.eup %2226  ;;  %v971_v52 = vadd.f32 %v2170_v41, %v970_v51 }
 0x5b8   :  { %v987_v42 = vadd.f32 1.0, %v2227_v34 }
 0x5b9   :  { %v976_v56 = vmul.f32 0.044715, %v971_v52  ;;  %v974_v1 = vmul.f32 0.5, %v971_v52 }
 0x5ba   :  { %v989_v58 = vmul.f32 %v987_v42, %v973_v54  ;;  %v2173_v54 = vld [vmem:[%s3101_s19] ss:$0 sm:$0xff] }
 0x5bb   :  { %v978_v59 = vmul.f32 %v976_v56, %v971_v52 }
 0x5bc   :  { %2065 = vmatmul.msk.f32.vlgmr.msrb.gmra.mxu1 %vm1003_vm0, %v989_v58 }
 0x5bd   :  { %v980_v60 = vmul.f32 %v978_v59, %v971_v52 }
 0x5bf   :  { %v982_v61 = vadd.f32 %v980_v60, %v971_v52 }
 0x5c1   :  { %v984_v50 = vmul.f32 0.7978846, %v982_v61 }
 0x5c3   :  { %2228 = vtanh.f32 %v984_v50 }
 0x5c9   :  { %v2229_v62 = vpop.eup %2228 }
 0x5ca   :  { %v988_v2 = vadd.f32 1.0, %v2229_v62 }
 0x5cc   :  { %v990_v46 = vmul.f32 %v988_v2, %v974_v1 }
 0x5ce   :  { %2066 = vmatmul.msk.f32.gmra.mxu1 %vm1003_vm0, %v990_v46 }
 0x639   :  { %v1027_v4 = vpop.f32.mrf.mxu1 }
 0x63a   :  { %v1028_v6 = vadd.f32 %v2171_v3, %v1027_v4 }
 0x63c   :  { %v1033_v7 = vadd.f32 %v1028_v6, %v2764_v13  ;;  %v2070_v13 = vld [vmem:[%s3128_s21 + $0x38] sm:$0xff]  ;;  %v2174_v6 = vld [vmem:[%s3091_s9 + $0x1] ss:$0 sm:$0xff] }
 0x63d   :  { %1123 = vmatpush.msra.mxu2 %v2070_v13 }
 0x63e   :  { %v1037_v8 = vsel %vm170_vm1, %v1033_v7, 0.0  ;;  %v1045_v10 = vmul.f32 %v1033_v7, %v1033_v7 }
 0x63f   :  { %1038 = vadd.xlane.f32.xlu0 %v1037_v8  ;;  %1124 = vmatpush.msra.mxu2 %v2069_v17 }
 0x640   :  { %v1047_v9 = vsel %vm170_vm1, %v1045_v10, 0.0 }
 0x641   :  { %1048 = vadd.xlane.f32.xlu2 %v1047_v9  ;;  %1125 = vmatpush.msra.mxu2 %v2068_v18 }
 0x643   :  { %1126 = vmatpush.msra.mxu2 %v2067_v21 }
 0x64b   :  { %v1030_v5 = vpop.f32.mrf.mxu1 }
 0x64c   :  { %v1031_v11 = vadd.f32 %v2171_v3, %v1030_v5 }
 0x64e   :  { %v1034_v22 = vadd.f32 %v1031_v11, %v935_v29 }
 0x650   :  { %v1040_v15 = vsel %vm170_vm1, %v1034_v22, 0.0  ;;  %v1046_v16 = vmul.f32 %v1034_v22, %v1034_v22 }
 0x651   :  { %1041 = vadd.xlane.f32.xlu0 %v1040_v15 }
 0x652   :  { %v1050_v12 = vsel %vm170_vm1, %v1046_v16, 0.0 }
 0x653   :  { %1051 = vadd.xlane.f32.xlu1 %v1050_v12 }
 0x6b2   :  { %v1039_v20 = vpop.xlane.xlu0 %1038 }
 0x6b3   :  { %v1043_v23 = vmul.f32 %v1039_v20, %v2519_v40 }
 0x6b4   :  { %v1049_v25 = vpop.xlane.xlu2 %1048 }
 0x6b5   :  { %v1055_v28 = vmul.f32 %v1043_v23, %v1043_v23  ;;  %v1053_v29 = vmul.f32 %v1049_v25, %v2519_v40  ;;  %v1059_v48 = vsub.f32 %v1033_v7, %v1043_v23 }
 0x6b7   :  { %v1057_v30 = vsub.f32 %v1053_v29, %v1055_v28 }
 0x6b9   :  { %v1061_v24 = vadd.f32 1e-05, %v1057_v30 }
 0x6bb   :  { %2230 = vrsqrt.f32 %v1061_v24  ;;  %vm1069_vm3 = vweird.f32 %v1061_v24 }
 0x6c1   :  { %v2231_v32 = vpop.eup %2230 }
 0x6c2   :  { %v1064_v35 = vmul.f32 %v2231_v32, %v1061_v24  ;;  %vm1070_vm2 = vweird.f32 %v2231_v32 }
 0x6c3   :  { %vm1071_vm4 = vmor %vm1069_vm3, %vm1070_vm2 }
 0x6c4   :  { %v1065_v36 = vmul.f32 %v2231_v32, %v1064_v35  ;;  %v1042_v37 = vpop.xlane.xlu0 %1041 }
 0x6c5   :  { %v1044_v39 = vmul.f32 %v1042_v37, %v2519_v40 }
 0x6c6   :  { %v1066_v31 = vmul.f32 0.5, %v1065_v36  ;;  %v1052_v41 = vpop.xlane.xlu1 %1051 }
 0x6c7   :  { %v1056_v43 = vmul.f32 %v1044_v39, %v1044_v39  ;;  %v1054_v45 = vmul.f32 %v1052_v41, %v2519_v40  ;;  %v1060_v1 = vsub.f32 %v1034_v22, %v1044_v39 }
 0x6c8   :  { %v1067_v14 = vsub.f32 1.5, %v1066_v31 }
 0x6c9   :  { %v1058_v47 = vsub.f32 %v1054_v45, %v1056_v43 }
 0x6ca   :  { %v1068_v19 = vmul.f32 %v2231_v32, %v1067_v14 }
 0x6cb   :  { %v1062_v51 = vadd.f32 1e-05, %v1058_v47 }
 0x6cc   :  { %v1072_v34 = vsel %vm1071_vm4, %v2231_v32, %v1068_v19 }
 0x6cd   :  { %v1083_v52 = vmul.f32 %v1072_v34, %v1059_v48  ;;  %2232 = vrsqrt.f32 %v1062_v51  ;;  %vm1079_vm6 = vweird.f32 %v1062_v51 }
 0x6cf   :  { %v1088_v42 = vmul.f32 %v2172_v49, %v1083_v52 }
 0x6d1   :  { %v2828_v56 = vadd.f32 %v2173_v54, %v1088_v42 }
 0x6d3   :  { %v2233_v58 = vpop.eup %2232  ;;  %2072 = vmatmul.msk.f32.vlgmr.msra.gmra.mxu2 %vm170_vm1, %v2828_v56 }
 0x6d4   :  { %v1074_v59 = vmul.f32 %v2233_v58, %v1062_v51  ;;  %vm1080_vm5 = vweird.f32 %v2233_v58 }
 0x6d5   :  { %vm1081_vm7 = vmor %vm1079_vm6, %vm1080_vm5  ;;  %vm1940_vm5 = vcmask 1041409   ;;  %vm1996_vm6 = vcmask 1024  }
 0x6d6   :  { %v1075_v60 = vmul.f32 %v2233_v58, %v1074_v59 }
 0x6d8   :  { %v1076_v61 = vmul.f32 0.5, %v1075_v60 }
 0x6da   :  { %v1077_v50 = vsub.f32 1.5, %v1076_v61 }
 0x6dc   :  { %v1078_v62 = vmul.f32 %v2233_v58, %v1077_v50 }
 0x6de   :  { %v1082_v2 = vsel %vm1081_vm7, %v2233_v58, %v1078_v62 }
 0x6df   :  { %v1084_v46 = vmul.f32 %v1082_v2, %v1060_v1 }
 0x6e1   :  { %v1089_v3 = vmul.f32 %v2172_v49, %v1084_v46 }
 0x6e3   :  { %v2832_v4 = vadd.f32 %v2173_v54, %v1089_v3 }
 0x6e5   :  { %2073 = vmatmul.msk.f32.gmra.mxu2 %vm170_vm1, %v2832_v4 }
 0x756   :  { %v1128_v7 = vpop.f32.mrf.mxu2 }
 0x757   :  { %v1129_v8 = vadd.f32 %v2174_v6, %v1128_v7 }
 0x759   :  { %1151 = vrot.lane.b32.xlu2 %v1129_v8, %s2297_s28  ;;  %v1142_v10 = vmul.f32 %v1129_v8, %v2632_v0  ;;  %v1144_v9 = vmul.f32 %v1129_v8, %v2630_v63  ;;  %v2852_v16 = vmul.f32 %v1129_v8, %v2656_v27  ;;  %v2859_v13 = vmul.f32 %v1129_v8, %v2670_v38 }
 0x75a   :  { %v1140_v21 = vmul.f32 %v1129_v8, %v2591_v33  ;;  %v1138_v35 = vmul.f32 %v1129_v8, %v2574_v26 }
 0x75b   :  { %v2148_v5 = vpack.i.bf16 %v1142_v10, %v1144_v9 }
 0x75d   :  { %2149 = vrot.lane.b32.xlu1 %v2148_v5, %s2296_s29 }
 0x768   :  { %v1131_v11 = vpop.f32.mrf.mxu2 }
 0x769   :  { %v2843_v22 = vadd.f32 %v2174_v6, %v1131_v11 }
 0x76b   :  { %1179 = vrot.lane.b32.xlu0 %v2843_v22, %s2297_s28  ;;  %v2849_v15 = vmul.f32 %v2843_v22, %v2632_v0  ;;  %v2856_v12 = vmul.f32 %v2843_v22, %v2630_v63  ;;  %v1134_v0 = vmul.f32 %v1129_v8, %v2537_v55  ;;  %v1136_v63 = vmul.f32 %v1129_v8, %v2540_v57 }
 0x76c   :  { %v1135_v29 = vmul.f32 %v2843_v22, %v2537_v55  ;;  %v1137_v30 = vmul.f32 %v2843_v22, %v2540_v57  ;;  %v1139_v32 = vmul.f32 %v2843_v22, %v2574_v26  ;;  %v1141_v55 = vmul.f32 %v2843_v22, %v2591_v33 }
 0x76d   :  { %v2158_v17 = vpack.i.bf16 %v2852_v16, %v2849_v15  ;;  %v2153_v18 = vpack.i.bf16 %v2859_v13, %v2856_v12 }
 0x7b3   :  { %v1152_v20 = vpop.permute.xlu2 %1151 }
 0x7b4   :  { %2074 = vmatpush.xpose.msk.msrb.mxu3 %vm170_vm1, %v1152_v20  ;;  %2078 = vmatpush.xpose.msk.msrb.mxu2 %vm170_vm1, %v1152_v20 }
 0x7b7   :  { %2075 = vmatmul.msk.f32.vlgmr.msrb.gmra.mxu3 %vm170_vm1, %v1134_v0  ;;  %2079 = vmatmul.msk.f32.vlgmr.msrb.gmra.mxu2 %vm170_vm1, %v1136_v63 }
 0x7b8   :  { %2086 = vmatpush.xpose.msk.msra.mxu2 %vm170_vm1, %v1152_v20 }
 0x7bf   :  { %2087 = vmatmul.msk.f32.vlgmr.msra.gmra.mxu2 %vm170_vm1, %v1140_v21 }
 0x7cf   :  { %v2150_v23 = vpop.permute.xlu1 %2149 }
 0x7d0   :  { %v2151_v25 = vunpack.i.l.bf16 %v2150_v23  ;;  %v2152_v24 = vunpack.i.h.bf16 %v2150_v23 }
 0x7d2   :  { %1508 = vmatpush.msrb.mxu2 %v2151_v25 }
 0x7dd   :  { %v1180_v28 = vpop.permute.xlu0 %1179 }
 0x7de   :  { %2076 = vmatpush.xpose.msk.msrb.mxu0 %vm170_vm1, %v1180_v28  ;;  %2080 = vmatpush.xpose.msk.msra.mxu3 %vm170_vm1, %v1180_v28 }
 0x7df   :  { %2084 = vmatpush.xpose.msk.msra.mxu1 %vm170_vm1, %v1180_v28 }
 0x7e1   :  { %2077 = vmatmul.msk.f32.vlgmr.msrb.gmra.mxu0 %vm170_vm1, %v1135_v29  ;;  %2081 = vmatmul.msk.f32.vlgmr.msra.gmra.mxu3 %vm170_vm1, %v1137_v30 }
 0x7e2   :  { %2082 = vmatpush.xpose.msk.msra.mxu0 %vm170_vm1, %v1152_v20  ;;  %2088 = vmatpush.xpose.msk.msrb.mxu3 %vm170_vm1, %v1180_v28 }
 0x7e3   :  { %2085 = vmatmul.msk.f32.vlgmr.msra.gmra.mxu1 %vm170_vm1, %v1139_v32 }
 0x7e6   :  { %1454 = vmatpush.msrb.mxu0 %v2152_v24 }
 0x7e9   :  { %2083 = vmatmul.msk.f32.vlgmr.msra.gmra.mxu0 %vm170_vm1, %v1138_v35  ;;  %2089 = vmatmul.msk.f32.vlgmr.msrb.gmra.mxu3 %vm170_vm1, %v1141_v55  ;;  %v1147_v35 = vmul.f32 %v2843_v22, %v2656_v27 }
 0x83a   :  { %v1226_v57 = vpop.f32.mrf.mxu2  ;;  %v1175_v39 = vpop.f32.mrf.mxu3 }
 0x83b   :  { %v1227_v36 = vadd.f32 %v1226_v57, %v2614_v44  ;;  %v1176_v31 = vadd.f32 %v1175_v39, %v2614_v44 }
 0x83d   :  { %v1350_v37 = vsel %vm518_vm9, %v1227_v36, -inf  ;;  %v1344_v26 = vsel %vm518_vm9, %v1176_v31, -inf }
 0x83e   :  { %1351 = vmax.xlane.f32.xlu1 %v1350_v37 }
 0x842   :  { %v1318_v41 = vpop.f32.mrf.mxu2 }
 0x843   :  { %v1319_v43 = vadd.f32 %v1318_v41, %v2614_v44 }
 0x845   :  { %v1362_v33 = vsel %vm518_vm9, %v1319_v43, -inf }
 0x846   :  { %1345 = vmax.xlane.f32.xlu1 %v1344_v26  ;;  %1363 = vmax.xlane.f32.xlu0 %v1362_v33 }
 0x85e   :  { %v1203_v45 = vpop.f32.mrf.mxu0 }
 0x85f   :  { %v1204_v14 = vadd.f32 %v1203_v45, %v2623_v53  ;;  %v1149_v45 = vmul.f32 %v2843_v22, %v2670_v38 }
 0x860   :  { %v1295_v47 = vpop.f32.mrf.mxu1 }
 0x861   :  { %v1296_v19 = vadd.f32 %v1295_v47, %v2623_v53  ;;  %v1347_v48 = vsel %vm518_vm9, %v1204_v14, -inf }
 0x862   :  { %1348 = vmax.xlane.f32.xlu2 %v1347_v48 }
 0x863   :  { %v1359_v49 = vsel %vm518_vm9, %v1296_v19, -inf }
 0x864   :  { %1360 = vmax.xlane.f32.xlu1 %v1359_v49  ;;  %v1249_v51 = vpop.f32.mrf.mxu3 }
 0x865   :  { %v1250_v34 = vadd.f32 %v1249_v51, %v2623_v53 }
 0x866   :  { %v1272_v54 = vpop.f32.mrf.mxu0 }
 0x867   :  { %v1353_v52 = vsel %vm518_vm9, %v1250_v34, -inf  ;;  %v1273_v42 = vadd.f32 %v1272_v54, %v2614_v44 }
 0x869   :  { %v1356_v58 = vsel %vm518_vm9, %v1273_v42, -inf }
 0x86c   :  { %1354 = vmax.xlane.f32.xlu1 %v1353_v52  ;;  %v1341_v59 = vpop.f32.mrf.mxu3 }
 0x86d   :  { %v1342_v60 = vadd.f32 %v1341_v59, %v2623_v53 }
 0x86f   :  { %v1365_v61 = vsel %vm518_vm9, %v1342_v60, -inf }
 0x874   :  { %1357 = vmax.xlane.f32.xlu1 %v1356_v58 }
 0x87c   :  { %1366 = vmax.xlane.f32.xlu1 %v1365_v61 }
 0x8b1   :  { %v1352_v50 = vpop.xlane.xlu1 %1351 }
 0x8b2   :  { %v1370_v62 = vsub.f32 %v1227_v36, %v1352_v50 }
 0x8b4   :  { %v1380_v1 = vmul.f32 1.442695, %v1370_v62 }
 0x8b6   :  { %2234 = vpow2.f32 %v1380_v1 }
 0x8b9   :  { %v1346_v2 = vpop.xlane.xlu1 %1345  ;;  %v1364_v46 = vpop.xlane.xlu0 %1363 }
 0x8ba   :  { %v1368_v3 = vsub.f32 %v1176_v31, %v1346_v2  ;;  %v1374_v6 = vsub.f32 %v1319_v43, %v1364_v46 }
 0x8bc   :  { %v2235_v7 = vpop.eup %2234  ;;  %v1376_v8 = vmul.f32 1.442695, %v1368_v3  ;;  %v1388_v44 = vmul.f32 1.442695, %v1374_v6 }
 0x8bd   :  { %v1398_v10 = vsel %vm518_vm9, %v2235_v7, 0.0 }
 0x8be   :  { %2236 = vpow2.f32 %v1376_v8  ;;  %1399 = vadd.xlane.f32.xlu1 %v1398_v10 }
 0x8bf   :  { %2238 = vpow2.f32 %v1388_v44 }
 0x8c4   :  { %v2237_v53 = vpop.eup %2236 }
 0x8c5   :  { %v2910_v9 = vpop.eup %2238  ;;  %v1392_v5 = vsel %vm518_vm9, %v2237_v53, 0.0 }
 0x8c6   :  { %1393 = vadd.xlane.f32.xlu1 %v1392_v5  ;;  %v1410_v11 = vsel %vm518_vm9, %v2910_v9, 0.0 }
 0x8c7   :  { %1411 = vadd.xlane.f32.xlu2 %v1410_v11  ;;  %v2100_v11 = vld [vmem:[%s3092_s10 + $0x30] sm:$0xff] }
 0x8d5   :  { %v1349_v20 = vpop.xlane.xlu2 %1348 }
 0x8d6   :  { %v1369_v63 = vsub.f32 %v1204_v14, %v1349_v20  ;;  %v2099_v20 = vld [vmem:[%s3092_s10 + $0x28] sm:$0xff] }
 0x8d7   :  { %v1361_v0 = vpop.xlane.xlu1 %1360 }
 0x8d8   :  { %v1378_v21 = vmul.f32 1.442695, %v1369_v63  ;;  %v1373_v29 = vsub.f32 %v1296_v19, %v1361_v0  ;;  %v2098_v0 = vld [vmem:[%s3092_s10 + $0x20] sm:$0xff] }
 0x8da   :  { %2240 = vpow2.f32 %v1378_v21  ;;  %v1386_v32 = vmul.f32 1.442695, %v1373_v29 }
 0x8df   :  { %v1355_v23 = vpop.xlane.xlu1 %1354  ;;  %2159 = vrot.lane.b32.xlu1 %v2158_v17, %s2296_s29 }
 0x8e0   :  { %v1371_v25 = vsub.f32 %v1250_v34, %v1355_v23  ;;  %v2241_v28 = vpop.eup %2240 }
 0x8e1   :  { %v1395_v24 = vsel %vm518_vm9, %v2241_v28, 0.0 }
 0x8e2   :  { %v1382_v30 = vmul.f32 1.442695, %v1371_v25  ;;  %1396 = vadd.xlane.f32.xlu0 %v1395_v24 }
 0x8e4   :  { %2242 = vpow2.f32 %v1382_v30 }
 0x8e5   :  { %2244 = vpow2.f32 %v1386_v32 }
 0x8e7   :  { %v1358_v55 = vpop.xlane.xlu1 %1357  ;;  %1568 = vrot.lane.b32.xlu1 %v1147_v35, %s2296_s29 }
 0x8e8   :  { %v1372_v57 = vsub.f32 %v1273_v42, %v1358_v55 }
 0x8ea   :  { %v2243_v36 = vpop.eup %2242  ;;  %v1384_v37 = vmul.f32 1.442695, %v1372_v57 }
 0x8eb   :  { %v1401_v15 = vsel %vm518_vm9, %v2243_v36, 0.0  ;;  %v2245_v17 = vpop.eup %2244 }
 0x8ec   :  { %2246 = vpow2.f32 %v1384_v37  ;;  %1402 = vadd.xlane.f32.xlu0 %v1401_v15  ;;  %v1407_v27 = vsel %vm518_vm9, %v2245_v17, 0.0 }
 0x8ef   :  { %v1367_v16 = vpop.xlane.xlu1 %1366 }
 0x8f0   :  { %v1375_v39 = vsub.f32 %v1342_v60, %v1367_v16 }
 0x8f2   :  { %v2247_v31 = vpop.eup %2246  ;;  %v1390_v41 = vmul.f32 1.442695, %v1375_v39 }
 0x8f3   :  { %v1404_v43 = vsel %vm518_vm9, %v2247_v31, 0.0 }
 0x8f4   :  { %2248 = vpow2.f32 %v1390_v41  ;;  %1405 = vadd.xlane.f32.xlu2 %v1404_v43  ;;  %1408 = vadd.xlane.f32.xlu0 %v1407_v27 }
 0x8fa   :  { %v2249_v26 = vpop.eup %2248 }
 0x8fb   :  { %v1413_v33 = vsel %vm518_vm9, %v2249_v26, 0.0 }
 0x8fc   :  { %1414 = vadd.xlane.f32.xlu0 %v1413_v33 }
 0x90c   :  { %2154 = vrot.lane.b32.xlu2 %v2153_v18, %s2296_s29 }
 0x910   :  { %1622 = vrot.lane.b32.xlu0 %v1149_v45, %s2296_s29  ;;  %s3134_s29 = sld [smem:[#allocation18_spill]] }
 0x931   :  { %v1400_v14 = vpop.xlane.xlu1 %1399 }
 0x932   :  { %2250 = vrcp.f32 %v1400_v14 }
 0x938   :  { %v2251_v47 = vpop.eup %2250 }
 0x939   :  { %v1426_v19 = vmul.f32 %v2251_v47, %v2235_v7  ;;  %v1394_v48 = vpop.xlane.xlu1 %1393 }
 0x93a   :  { %2252 = vrcp.f32 %v1394_v48  ;;  %v1412_v54 = vpop.xlane.xlu2 %1411 }
 0x93b   :  { %2092 = vmatmul.msk.f32.vlgmr.msrb.gmra.mxu2 %vm518_vm9, %v1426_v19 }
 0x940   :  { %v2253_v49 = vpop.eup %2252 }
 0x941   :  { %v1424_v51 = vmul.f32 %v2253_v49, %v2237_v53 }
 0x943   :  { %2090 = vmatmul.msk.f32.vlgmr.msrb.gmra.mxu0 %vm518_vm9, %v1424_v51 }
 0x951   :  { %v2160_v34 = vpop.permute.xlu1 %2159 }
 0x952   :  { %v2162_v12 = vunpack.i.h.bf16 %v2160_v34  ;;  %v2161_v13 = vunpack.i.l.bf16 %v2160_v34 }
 0x954   :  { %1481 = vmatpush.msrb.mxu1 %v2161_v13  ;;  %1562 = vmatpush.msra.mxu0 %v2162_v12 }
 0x955   :  { %v1397_v38 = vpop.xlane.xlu0 %1396 }
 0x956   :  { %2254 = vrcp.f32 %v1397_v38 }
 0x957   :  { %2256 = vrcp.f32 %v1412_v54 }
 0x959   :  { %v1569_v22 = vpop.permute.xlu1 %1568 }
 0x95a   :  { %1589 = vmatpush.msra.mxu1 %v1569_v22  ;;  %v2109_v22 = vld [vmem:[%s3096_s14 + $0x30] sm:$0xff] }
 0x95c   :  { %v2255_v18 = vpop.eup %2254 }
 0x95d   :  { %v1425_v52 = vmul.f32 %v2255_v18, %v2241_v28  ;;  %v2257_v60 = vpop.eup %2256  ;;  %v2107_v18 = vld [vmem:[%s3096_s14 + $0x20] sm:$0xff] }
 0x95e   :  { %v1430_v8 = vmul.f32 %v2257_v60, %v2910_v9  ;;  %v2101_v9 = vld [vmem:[%s3092_s10 + $0x38] sm:$0xff] }
 0x95f   :  { %v1403_v42 = vpop.xlane.xlu0 %1402  ;;  %2091 = vmatmul.msk.f32.vlgmr.msrb.gmra.mxu1 %vm518_vm9, %v1425_v52  ;;  %1690 = vmatpush.msrb.mxu0 %v2101_v9 }
 0x960   :  { %2258 = vrcp.f32 %v1403_v42 }
 0x961   :  { %1691 = vmatpush.msrb.mxu0 %v2100_v11  ;;  %v2176_v11 = vld [vmem:[%s3094_s12 + $0x1] ss:$0 sm:$0xff] }
 0x963   :  { %1692 = vmatpush.msrb.mxu0 %v2099_v20 }
 0x965   :  { %1693 = vmatpush.msrb.mxu0 %v2098_v0 }
 0x966   :  { %v2259_v61 = vpop.eup %2258 }
 0x967   :  { %v1409_v58 = vpop.xlane.xlu0 %1408  ;;  %v1406_v59 = vpop.xlane.xlu2 %1405  ;;  %v1427_v7 = vmul.f32 %v2259_v61, %v2243_v36 }
 0x968   :  { %2260 = vrcp.f32 %v1409_v58 }
 0x969   :  { %2262 = vrcp.f32 %v1406_v59 }
 0x96e   :  { %v2261_v50 = vpop.eup %2260 }
 0x96f   :  { %v2263_v62 = vpop.eup %2262  ;;  %v1429_v1 = vmul.f32 %v2261_v50, %v2245_v17  ;;  %v2155_v2 = vpop.permute.xlu2 %2154 }
 0x970   :  { %v1428_v46 = vmul.f32 %v2263_v62, %v2247_v31  ;;  %v2157_v3 = vunpack.i.h.bf16 %v2155_v2  ;;  %v2156_v6 = vunpack.i.l.bf16 %v2155_v2  ;;  %v1415_v44 = vpop.xlane.xlu0 %1414 }
 0x971   :  { %2095 = vmatmul.msk.f32.vlgmr.msra.gmra.mxu1 %vm518_vm9, %v1429_v1  ;;  %2264 = vrcp.f32 %v1415_v44 }
 0x972   :  { %2094 = vmatmul.msk.f32.vlgmr.msra.gmra.mxu0 %vm518_vm9, %v1428_v46  ;;  %1535 = vmatpush.msra.mxu3 %v2156_v6 }
 0x973   :  { %1616 = vmatpush.msra.mxu2 %v2157_v3  ;;  %2093 = vmatmul.msk.f32.vlgmr.msra.gmra.mxu3 %vm518_vm9, %v1427_v7 }
 0x974   :  { %2096 = vmatmul.msk.f32.vlgmr.msra.gmra.mxu2 %vm518_vm9, %v1430_v8 }
 0x977   :  { %v2265_v10 = vpop.eup %2264 }
 0x978   :  { %v1431_v53 = vmul.f32 %v2265_v10, %v2249_v26  ;;  %v2175_v26 = vld [vmem:[%s3093_s11 + $0x1] ss:$0 sm:$0xff] }
 0x982   :  { %v1623_v5 = vpop.permute.xlu0 %1622 }
 0x983   :  { %1643 = vmatpush.msrb.mxu3 %v1623_v5 }
 0x984   :  { %2097 = vmatmul.msk.f32.vlgmr.msrb.gmra.mxu3 %vm518_vm9, %v1431_v53 }
 0x9be   :  { %v1510_v21 = vpop.f32.mrf.mxu2 }
 0x9bf   :  { %v1649_v28 = vsel %vm170_vm1, %v1510_v21, 0.0 }
 0x9c0   :  { %v1456_v63 = vpop.f32.mrf.mxu0 }
 0x9c1   :  { %v1648_v25 = vsel %vm170_vm1, %v1456_v63, 0.0  ;;  %v2177_v63 = vld [vmem:[%s3095_s13 + $0x1] ss:$0 sm:$0xff] }
 0x9c2   :  { %v1650_v30 = vadd.f32 %v1649_v28, %v1648_v25 }
 0x9dc   :  { %v1483_v57 = vpop.f32.mrf.mxu1 }
 0x9dd   :  { %v1655_v15 = vsel %vm170_vm1, %v1483_v57, 0.0 }
 0x9ee   :  { %v1591_v16 = vpop.f32.mrf.mxu1 }
 0x9ef   :  { %v1564_v23 = vpop.f32.mrf.mxu0  ;;  %v1658_v39 = vsel %vm170_vm1, %v1591_v16, 0.0  ;;  %v2120_v16 = vld [vmem:[%s3098_s16 + $0x70] sm:$0xff] }
 0x9f0   :  { %v1651_v29 = vsel %vm170_vm1, %v1564_v23, 0.0 }
 0x9f1   :  { %v1652_v24 = vadd.f32 %v1651_v29, %v1650_v30 }
 0x9f6   :  { %v1537_v36 = vpop.f32.mrf.mxu3 }
 0x9f7   :  { %v1618_v32 = vpop.f32.mrf.mxu2  ;;  %v1656_v37 = vsel %vm170_vm1, %v1537_v36, 0.0 }
 0x9f8   :  { %v1653_v35 = vsel %vm170_vm1, %v1618_v32, 0.0  ;;  %v1657_v17 = vadd.f32 %v1656_v37, %v1655_v15  ;;  %v2121_v15 = vld [vmem:[%s3098_s16 + $0x78] sm:$0xff] }
 0x9f9   :  { %v1654_v55 = vadd.f32 %v1653_v35, %v1652_v24  ;;  %1850 = vmatpush.msrb.mxu2 %v2121_v15 }
 0x9fa   :  { %v1659_v41 = vadd.f32 %v1658_v39, %v1657_v17  ;;  %v2119_v17 = vld [vmem:[%s3098_s16 + $0x68] sm:$0xff]  ;;  %v2118_v39 = vld [vmem:[%s3098_s16 + $0x60] sm:$0xff] }
 0x9fb   :  { %2103 = vmatmul.msk.f32.vlgmr.msrb.gmra.mxu0 %vm170_vm1, %v1654_v55  ;;  %1851 = vmatpush.msrb.mxu2 %v2120_v16 }
 0x9fd   :  { %1852 = vmatpush.msrb.mxu2 %v2119_v17 }
 0x9ff   :  { %1853 = vmatpush.msrb.mxu2 %v2118_v39 }
 0xa07   :  { %v1645_v31 = vpop.f32.mrf.mxu3 }
 0xa08   :  { %v1660_v43 = vsel %vm170_vm1, %v1645_v31, 0.0  ;;  %v2117_v31 = vld [vmem:[%s3098_s16 + $0x58] sm:$0xff] }
 0xa09   :  { %v1661_v27 = vadd.f32 %v1660_v43, %v1659_v41  ;;  %1854 = vmatpush.msrb.mxu2 %v2117_v31  ;;  %v2116_v41 = vld [vmem:[%s3098_s16 + $0x50] sm:$0xff]  ;;  %v2115_v43 = vld [vmem:[%s3098_s16 + $0x48] sm:$0xff] }
 0xa0b   :  { %2104 = vmatmul.msk.f32.gmra.mxu0 %vm170_vm1, %v1661_v27  ;;  %1855 = vmatpush.msrb.mxu2 %v2116_v41  ;;  %v2114_v27 = vld [vmem:[%s3098_s16 + $0x40] sm:$0xff] }
 0xa0d   :  { %1856 = vmatpush.msrb.mxu2 %v2115_v43 }
 0xa0f   :  { %1857 = vmatpush.msrb.mxu2 %v2114_v27 }
 0xa78   :  { %v1695_v33 = vpop.f32.mrf.mxu0 }
 0xa79   :  { %v1696_v45 = vadd.f32 %v2175_v26, %v1695_v33 }
 0xa7b   :  { %v1701_v14 = vadd.f32 %v1696_v45, %v2828_v56  ;;  %v2110_v56 = vld [vmem:[%s3096_s14 + $0x38] sm:$0xff] }
 0xa7c   :  { %1793 = vmatpush.msrb.mxu1 %v2110_v56 }
 0xa7d   :  { %v1707_v47 = vsel %vm170_vm1, %v1701_v14, 0.0  ;;  %v1715_v19 = vmul.f32 %v1701_v14, %v1701_v14 }
 0xa7e   :  { %1708 = vadd.xlane.f32.xlu2 %v1707_v47  ;;  %1794 = vmatpush.msrb.mxu1 %v2109_v22 }
 0xa7f   :  { %v1717_v48 = vsel %vm170_vm1, %v1715_v19, 0.0 }
 0xa80   :  { %1718 = vadd.xlane.f32.xlu1 %v1717_v48 }
 0xa88   :  { %v1698_v49 = vpop.f32.mrf.mxu0 }
 0xa89   :  { %v1699_v51 = vadd.f32 %v2175_v26, %v1698_v49  ;;  %v2178_v26 = vld [vmem:[%s3097_s15 + $0x1] ss:$0 sm:$0xff] }
 0xa8b   :  { %v1702_v34 = vadd.f32 %v1699_v51, %v2832_v4  ;;  %v2108_v4 = vld [vmem:[%s3096_s14 + $0x28] sm:$0xff] }
 0xa8c   :  { %1795 = vmatpush.msrb.mxu1 %v2108_v4 }
 0xa8d   :  { %v1710_v12 = vsel %vm170_vm1, %v1702_v34, 0.0  ;;  %v1716_v13 = vmul.f32 %v1702_v34, %v1702_v34 }
 0xa8e   :  { %1711 = vadd.xlane.f32.xlu0 %v1710_v12  ;;  %1796 = vmatpush.msrb.mxu1 %v2107_v18 }
 0xa8f   :  { %v1720_v38 = vsel %vm170_vm1, %v1716_v13, 0.0 }
 0xa90   :  { %1721 = vadd.xlane.f32.xlu2 %v1720_v38 }
 0xaf1   :  { %v1709_v52 = vpop.xlane.xlu2 %1708 }
 0xaf2   :  { %v1713_v54 = vmul.f32 %v1709_v52, %v2519_v40 }
 0xaf3   :  { %v1719_v42 = vpop.xlane.xlu1 %1718 }
 0xaf4   :  { %v1725_v58 = vmul.f32 %v1713_v54, %v1713_v54  ;;  %v1723_v59 = vmul.f32 %v1719_v42, %v2519_v40  ;;  %v1729_v9 = vsub.f32 %v1701_v14, %v1713_v54 }
 0xaf6   :  { %v1727_v60 = vsub.f32 %v1723_v59, %v1725_v58 }
 0xaf8   :  { %v1731_v61 = vadd.f32 1e-05, %v1727_v60 }
 0xafa   :  { %2266 = vrsqrt.f32 %v1731_v61  ;;  %vm1739_vm9 = vweird.f32 %v1731_v61 }
 0xb00   :  { %v2267_v50 = vpop.eup %2266 }
 0xb01   :  { %v1734_v62 = vmul.f32 %v2267_v50, %v1731_v61  ;;  %v1712_v1 = vpop.xlane.xlu0 %1711  ;;  %vm1740_vm8 = vweird.f32 %v2267_v50  ;;  %v2179_v61 = vld [vmem:[%s3099_s17 + $0x1] ss:$0 sm:$0xff] }
 0xb02   :  { %v1714_v2 = vmul.f32 %v1712_v1, %v2519_v40  ;;  %vm1741_vm10 = vmor %vm1739_vm9, %vm1740_vm8 }
 0xb03   :  { %v1735_v46 = vmul.f32 %v2267_v50, %v1734_v62  ;;  %v1722_v3 = vpop.xlane.xlu2 %1721 }
 0xb04   :  { %v1726_v6 = vmul.f32 %v1714_v2, %v1714_v2  ;;  %v1724_v7 = vmul.f32 %v1722_v3, %v2519_v40  ;;  %v1730_v35 = vsub.f32 %v1702_v34, %v1714_v2 }
 0xb05   :  { %v1736_v8 = vmul.f32 0.5, %v1735_v46 }
 0xb06   :  { %v1728_v44 = vsub.f32 %v1724_v7, %v1726_v6 }
 0xb07   :  { %v1737_v10 = vsub.f32 1.5, %v1736_v8 }
 0xb08   :  { %v1732_v53 = vadd.f32 1e-05, %v1728_v44 }
 0xb09   :  { %v1738_v5 = vmul.f32 %v2267_v50, %v1737_v10 }
 0xb0a   :  { %2268 = vrsqrt.f32 %v1732_v53  ;;  %vm1749_vm12 = vweird.f32 %v1732_v53 }
 0xb0b   :  { %v1742_v20 = vsel %vm1741_vm10, %v2267_v50, %v1738_v5 }
 0xb0c   :  { %v1753_v0 = vmul.f32 %v1742_v20, %v1729_v9  ;;  %v1931_v20 = vld [vmem:[%s3133_s0 + $0x10] sm:$0xff] }
 0xb0e   :  { %v1758_v21 = vmul.f32 %v2176_v11, %v1753_v0 }
 0xb10   :  { %v2269_v23 = vpop.eup %2268  ;;  %v1763_v25 = vadd.f32 %v2177_v63, %v1758_v21 }
 0xb11   :  { %v1744_v28 = vmul.f32 %v2269_v23, %v1732_v53  ;;  %vm1750_vm11 = vweird.f32 %v2269_v23 }
 0xb12   :  { %2112 = vmatmul.msk.f32.vlgmr.msrb.gmra.mxu1 %vm170_vm1, %v1763_v25  ;;  %vm1751_vm13 = vmor %vm1749_vm12, %vm1750_vm11 }
 0xb13   :  { %v1745_v29 = vmul.f32 %v2269_v23, %v1744_v28 }
 0xb15   :  { %v1746_v30 = vmul.f32 0.5, %v1745_v29 }
 0xb17   :  { %v1747_v24 = vsub.f32 1.5, %v1746_v30  ;;  %v1929_v30 = vld [vmem:[%s3133_s0] sm:$0xff] }
 0xb19   :  { %v1748_v32 = vmul.f32 %v2269_v23, %v1747_v24 }
 0xb1b   :  { %v1752_v55 = vsel %vm1751_vm13, %v2269_v23, %v1748_v32 }
 0xb1c   :  { %v1754_v57 = vmul.f32 %v1752_v55, %v1730_v35 }
 0xb1e   :  { %v1759_v36 = vmul.f32 %v2176_v11, %v1754_v57  ;;  %v1932_v11 = vld [vmem:[%s3133_s0 + $0x18] sm:$0xff] }
 0xb1f   :  { %1956 = vmatpush.msra.mxu3 %v1932_v11 }
 0xb20   :  { %v1764_v37 = vadd.f32 %v2177_v63, %v1759_v36 }
 0xb21   :  { %1957 = vmatpush.msra.mxu3 %v1931_v20 }
 0xb22   :  { %2113 = vmatmul.msk.f32.gmra.mxu1 %vm170_vm1, %v1764_v37 }
 0xb8f   :  { %v1798_v33 = vpop.f32.mrf.mxu1 }
 0xb90   :  { %v1799_v45 = vadd.f32 %v2178_v26, %v1798_v33 }
 0xb92   :  { %v1806_v14 = vmul.f32 0.044715, %v1799_v45  ;;  %v1804_v38 = vmul.f32 0.5, %v1799_v45 }
 0xb94   :  { %v1808_v47 = vmul.f32 %v1806_v14, %v1799_v45 }
 0xb96   :  { %v1810_v19 = vmul.f32 %v1808_v47, %v1799_v45 }
 0xb98   :  { %v1812_v48 = vadd.f32 %v1810_v19, %v1799_v45 }
 0xb9a   :  { %v1814_v49 = vmul.f32 0.7978846, %v1812_v48  ;;  %v2181_v48 = vld [vmem:[%s3101_s19 + $0x1] ss:$0 sm:$0xff] }
 0xb9c   :  { %2270 = vtanh.f32 %v1814_v49 }
 0xb9f   :  { %v1801_v51 = vpop.f32.mrf.mxu1 }
 0xba0   :  { %v1802_v34 = vadd.f32 %v2178_v26, %v1801_v51 }
 0xba2   :  { %v2271_v12 = vpop.eup %2270  ;;  %v1807_v13 = vmul.f32 0.044715, %v1802_v34  ;;  %v1805_v58 = vmul.f32 0.5, %v1802_v34 }
 0xba3   :  { %v1818_v56 = vadd.f32 1.0, %v2271_v12 }
 0xba4   :  { %v1809_v22 = vmul.f32 %v1807_v13, %v1802_v34 }
 0xba5   :  { %v1820_v4 = vmul.f32 %v1818_v56, %v1804_v38 }
 0xba6   :  { %v1811_v18 = vmul.f32 %v1809_v22, %v1802_v34 }
 0xba7   :  { %2123 = vmatmul.msk.f32.vlgmr.msrb.gmra.mxu2 %vm1003_vm0, %v1820_v4 }
 0xba8   :  { %v1813_v52 = vadd.f32 %v1811_v18, %v1802_v34  ;;  %v1968_v18 = vld [vmem:[%s3134_s29 + $0x18] sm:$0xff] }
 0xbaa   :  { %v1815_v54 = vmul.f32 0.7978846, %v1813_v52  ;;  %v1967_v52 = vld [vmem:[%s3134_s29 + $0x10] sm:$0xff] }
 0xbac   :  { %2272 = vtanh.f32 %v1815_v54  ;;  %v1966_v54 = vld [vmem:[%s3134_s29 + $0x8] sm:$0xff] }
 0xbb2   :  { %v2273_v42 = vpop.eup %2272 }
 0xbb3   :  { %v1819_v59 = vadd.f32 1.0, %v2273_v42  ;;  %v1965_v42 = vld [vmem:[%s3134_s29] sm:$0xff] }
 0xbb5   :  { %v1821_v60 = vmul.f32 %v1819_v59, %v1805_v58  ;;  %v2182_v58 = vld [vmem:[%s3135_s27] ss:$0 sm:$0xff] }
 0xbb7   :  { %2124 = vmatmul.msk.f32.gmra.mxu2 %vm1003_vm0, %v1821_v60 }
 0xc2a   :  { %v1859_v50 = vpop.f32.mrf.mxu2 }
 0xc2b   :  { %v1860_v62 = vadd.f32 %v2179_v61, %v1859_v50  ;;  %v2183_v50 = vld [vmem:[#allocation3] ss:$0 sm:$0xff] }
 0xc2d   :  { %v3030_v1 = vadd.f32 %v1860_v62, %v1763_v25  ;;  %v1930_v25 = vld [vmem:[%s3133_s0 + $0x8] sm:$0xff] }
 0xc2e   :  { %1958 = vmatpush.msra.mxu3 %v1930_v25 }
 0xc2f   :  { %v1871_v2 = vsel %vm170_vm1, %v3030_v1, 0.0  ;;  %v1879_v10 = vmul.f32 %v3030_v1, %v3030_v1 }
 0xc30   :  { %1872 = vadd.xlane.f32.xlu2 %v1871_v2  ;;  %1959 = vmatpush.msra.mxu3 %v1929_v30 }
 0xc31   :  { %v1881_v53 = vsel %vm170_vm1, %v1879_v10, 0.0 }
 0xc32   :  { %1988 = vmatpush.msrb.mxu3 %v1968_v18 }
 0xc34   :  { %1989 = vmatpush.msrb.mxu3 %v1967_v52 }
 0xc36   :  { %1990 = vmatpush.msrb.mxu3 %v1966_v54 }
 0xc38   :  { %1991 = vmatpush.msrb.mxu3 %v1965_v42 }
 0xc3a   :  { %v1862_v46 = vpop.f32.mrf.mxu2 }
 0xc3b   :  { %v1863_v3 = vadd.f32 %v2179_v61, %v1862_v46 }
 0xc3d   :  { %v1866_v6 = vadd.f32 %v1863_v3, %v1764_v37 }
 0xc3f   :  { %v1874_v7 = vsel %vm170_vm1, %v1866_v6, 0.0  ;;  %v1880_v8 = vmul.f32 %v1866_v6, %v1866_v6 }
 0xc40   :  { %1875 = vadd.xlane.f32.xlu1 %v1874_v7 }
 0xc41   :  { %v1884_v44 = vsel %vm170_vm1, %v1880_v8, 0.0 }
 0xc42   :  { %1885 = vadd.xlane.f32.xlu0 %v1884_v44 }
 0xc48   :  { %1882 = vadd.xlane.f32.xlu1 %v1881_v53 }
 0xca3   :  { %v1873_v0 = vpop.xlane.xlu2 %1872 }
 0xca4   :  { %v1877_v28 = vmul.f32 %v1873_v0, %v2519_v40 }
 0xca6   :  { %v1889_v35 = vmul.f32 %v1877_v28, %v1877_v28  ;;  %v1893_v51 = vsub.f32 %v3030_v1, %v1877_v28 }
 0xcb3   :  { %v1876_v5 = vpop.xlane.xlu1 %1875 }
 0xcb4   :  { %v1878_v9 = vmul.f32 %v1876_v5, %v2519_v40 }
 0xcb5   :  { %v1886_v63 = vpop.xlane.xlu0 %1885 }
 0xcb6   :  { %v1890_v21 = vmul.f32 %v1878_v9, %v1878_v9  ;;  %v1888_v23 = vmul.f32 %v1886_v63, %v2519_v40  ;;  %v1894_v26 = vsub.f32 %v1866_v6, %v1878_v9 }
 0xcb8   :  { %v1892_v29 = vsub.f32 %v1888_v23, %v1890_v21 }
 0xcba   :  { %v1896_v24 = vadd.f32 1e-05, %v1892_v29 }
 0xcbb   :  { %v1883_v32 = vpop.xlane.xlu1 %1882 }
 0xcbc   :  { %2274 = vrsqrt.f32 %v1896_v24  ;;  %v1887_v55 = vmul.f32 %v1883_v32, %v2519_v40  ;;  %vm1913_vm15 = vweird.f32 %v1896_v24  ;;  %v2180_v40 = vld [vmem:[%s3100_s18 + $0x1] ss:$0 sm:$0xff] }
 0xcbe   :  { %v1891_v57 = vsub.f32 %v1887_v55, %v1889_v35 }
 0xcc0   :  { %v1895_v36 = vadd.f32 1e-05, %v1891_v57 }
 0xcc2   :  { %v2275_v37 = vpop.eup %2274  ;;  %2276 = vrsqrt.f32 %v1895_v36  ;;  %vm1903_vm3 = vweird.f32 %v1895_v36 }
 0xcc3   :  { %v1908_v15 = vmul.f32 %v2275_v37, %v1896_v24  ;;  %vm1914_vm14 = vweird.f32 %v2275_v37 }
 0xcc4   :  { %vm1915_vm0 = vmor %vm1913_vm15, %vm1914_vm14 }
 0xcc5   :  { %v1909_v16 = vmul.f32 %v2275_v37, %v1908_v15 }
 0xcc7   :  { %v1910_v17 = vmul.f32 0.5, %v1909_v16 }
 0xcc8   :  { %v2277_v39 = vpop.eup %2276 }
 0xcc9   :  { %v1911_v31 = vsub.f32 1.5, %v1910_v17  ;;  %v1898_v41 = vmul.f32 %v2277_v39, %v1895_v36  ;;  %vm1904_vm2 = vweird.f32 %v2277_v39 }
 0xcca   :  { %vm1905_vm4 = vmor %vm1903_vm3, %vm1904_vm2 }
 0xccb   :  { %v1912_v43 = vmul.f32 %v2275_v37, %v1911_v31  ;;  %v1899_v27 = vmul.f32 %v2277_v39, %v1898_v41 }
 0xccd   :  { %v1916_v33 = vsel %vm1915_vm0, %v2275_v37, %v1912_v43  ;;  %v1900_v45 = vmul.f32 0.5, %v1899_v27 }
 0xcce   :  { %v1918_v14 = vmul.f32 %v1916_v33, %v1894_v26 }
 0xccf   :  { %v1901_v47 = vsub.f32 1.5, %v1900_v45 }
 0xcd0   :  { %v1923_v19 = vmul.f32 %v2180_v40, %v1918_v14 }
 0xcd1   :  { %v1902_v49 = vmul.f32 %v2277_v39, %v1901_v47 }
 0xcd2   :  { %v1928_v13 = vadd.f32 %v2181_v48, %v1923_v19 }
 0xcd3   :  { %v1906_v34 = vsel %vm1905_vm4, %v2277_v39, %v1902_v49 }
 0xcd4   :  { %v1917_v12 = vmul.f32 %v1906_v34, %v1893_v51  ;;  %v1939_v22 = vrot.slane %v1928_v13, 7 }
 0xcd6   :  { %v1922_v38 = vmul.f32 %v2180_v40, %v1917_v12 }
 0xcd8   :  { %v1927_v56 = vadd.f32 %v2181_v48, %v1922_v38 }
 0xcda   :  { %v1941_v4 = vsel %vm1940_vm5, %v1939_v22, %v1927_v56 }
 0xcdb   :  { %2127 = vmatmul.msk.f32.vlgmr.msra.gmra.mxu3 %vm170_vm1, %v1941_v4 }
 0xd5e   :  { %v1961_v59 = vpop.f32.mrf.mxu3 }
 0xd5f   :  { %v1962_v60 = vadd.f32 %v2182_v58, %v1961_v59 }
 0xd61   :  { %2278 = vtanh.f32 %v1962_v60 }
 0xd67   :  { %v2279_v61 = vpop.eup %2278 }
 0xd68   :  { %2128 = vmatmul.msk.f32.vlgmr.msrb.gmra.mxu3 %vm170_vm1, %v2279_v61 }
 0xdeb   :  { %v1993_v62 = vpop.f32.mrf.mxu3 }
 0xdec   :  { %v1994_v1 = vadd.f32 %v2183_v50, %v1993_v62 }
 0xdee   :  { %1997 = vst.msk [vmem:[%s3136_s8] sm:$0x3] %vm1996_vm6, %v1994_v1 }
 0xdef   :  { %2002 = vsyncpa [#allocation5], 1 }

</bundles_post_ra>
